<compile_context>
chip_gen: v7x
topology: tpu7x:2x2x1
jax: 0.10.0
libtpu: 0.0.40
codegen_flags: <defaults>
</compile_context>

<pallas_src>
import jax
import jax.numpy as jnp
from jax.experimental import pallas as pl
from jax.experimental.pallas import tpu as pltpu

NUM_INPUTS = 784     # = 1 * 28 * 28
NUM_HIDDENS = 256
NUM_OUTPUTS = 10

OUT_PAD = 128        # lane-dense second-layer width (sliced back to 10 in wrapper)
TM = 256             # batch rows per grid step; B=1024 -> 4 steps (even, >=4):
                     # pipelines on v5e/v6e, 2 steps/core on v7x megacore.


def mlp_kernel(x_ref, w1_ref, b1_ref, w2_ref, b2_ref, o_ref):
    # x_ref: (TM, 784) f32    w1_ref: (784, 256) bf16   b1_ref: (1, 256) f32
    # w2_ref: (256, 128) f32  b2_ref: (1, 128) f32      o_ref: (TM, 128) bf16
    x_bf16 = x_ref[...].astype(jnp.bfloat16)                 # cast in VMEM (VPU)
    h = jnp.dot(x_bf16, w1_ref[...], preferred_element_type=jnp.float32)
    h = jnp.maximum(h + b1_ref[...], 0.0)                    # relu(x) = max(x, 0)
    # Layer 2 kept in f32: tiny FLOP share, avoids compounding bf16 rounding.
    out = jnp.dot(h, w2_ref[...], preferred_element_type=jnp.float32)
    o_ref[...] = (out + b2_ref[...]).astype(o_ref.dtype)


def prepare_params(w1, b1, w2, b2):
    """One-time parameter prep (hoisted out of the per-forward path)."""
    w1b = w1.astype(jnp.bfloat16)                                       # (784, 256)
    b1r = b1.reshape(1, NUM_HIDDENS).astype(jnp.float32)                # (1, 256)
    w2p = (jnp.zeros((NUM_HIDDENS, OUT_PAD), jnp.float32)
           .at[:, :NUM_OUTPUTS].set(w2.astype(jnp.float32)))            # (256, 128)
    b2r = (jnp.zeros((1, OUT_PAD), jnp.float32)
           .at[:, :NUM_OUTPUTS].set(b2.astype(jnp.float32)))            # (1, 128)
    return w1b, b1r, w2p, b2r


def net_forward(x, params):
    """Pallas equivalent of Net.forward: reshape to (-1, num_inputs), fused MLP."""
    w1b, b1r, w2p, b2r = params
    x2d = x.reshape((-1, NUM_INPUTS))
    B = x2d.shape[0]
    nb = (B + TM - 1) // TM
    b_pad = nb * TM
    if b_pad != B:
        # Only the batch dim is ever padded (zero rows, sliced off below).
        x2d = jnp.zeros((b_pad, NUM_INPUTS), x2d.dtype).at[:B].set(x2d)

    flops = 2 * b_pad * (NUM_INPUTS * NUM_HIDDENS + NUM_HIDDENS * OUT_PAD)
    bytes_accessed = (b_pad * NUM_INPUTS * 4          # x read (f32, unpadded K)
                      + w1b.size * 2                  # w1 bf16
                      + w2p.size * 4 + b1r.size * 4 + b2r.size * 4
                      + b_pad * OUT_PAD * 2)          # out write (bf16)

    out_padded = pl.pallas_call(
        mlp_kernel,
        out_shape=jax.ShapeDtypeStruct((b_pad, OUT_PAD), jnp.bfloat16),
        grid=(nb,),
        in_specs=[
            # x: streamed; last dim 784 == full array dim, so (8,128) rule ok.
            pl.BlockSpec((TM, NUM_INPUTS), lambda i: (i, 0)),
            pl.BlockSpec((NUM_INPUTS, NUM_HIDDENS), lambda i: (0, 0)),  # w1 resident
            pl.BlockSpec((1, NUM_HIDDENS), lambda i: (0, 0)),           # b1 resident
            pl.BlockSpec((NUM_HIDDENS, OUT_PAD), lambda i: (0, 0)),     # w2 resident
            pl.BlockSpec((1, OUT_PAD), lambda i: (0, 0)),               # b2 resident
        ],
        out_specs=pl.BlockSpec((TM, OUT_PAD), lambda i: (i, 0)),
        compiler_params=pltpu.CompilerParams(
            dimension_semantics=("parallel",)),
        cost_estimate=pl.CostEstimate(
            flops=flops, transcendentals=0, bytes_accessed=bytes_accessed),
    )(x2d, w1b, b1r, w2p, b2r)

    # Tiny slice + cast back to f32 (fuses into one small XLA op).
    return out_padded[:B, :NUM_OUTPUTS].astype(jnp.float32)


if __name__ == "__main__":
    key = jax.random.PRNGKey(0)
    kx, kw1, kw2 = jax.random.split(key, 3)

    # Deterministic parameter init matching the torch script:
    #   w* = randn(...) * 0.01, b* = zeros(...)
    w1 = jax.random.normal(kw1, (NUM_INPUTS, NUM_HIDDENS), dtype=jnp.float32) * 0.01
    w2 = jax.random.normal(kw2, (NUM_HIDDENS, NUM_OUTPUTS), dtype=jnp.float32) * 0.01
    b1 = jnp.zeros((NUM_HIDDENS,), dtype=jnp.float32)
    b2 = jnp.zeros((NUM_OUTPUTS,), dtype=jnp.float32)

    params = prepare_params(w1, b1, w2, b2)   # hoisted: done once per param set

    # NCHW input (B, C, H, W) = (1024, 1, 28, 28) -> flattens to (1024, 784);
    # exercises a 4-step batch grid at TM=256 (pipelined, even for v7x megacore).
    B = 1024
    x = jax.random.normal(kx, (B, 1, 28, 28), dtype=jnp.float32)

    out = net_forward(x, params)
    out = jax.block_until_ready(out)

    # Pure-JAX f32 reference (layer-1 matmul uses bf16 inputs + bf16 output
    # store -> loosened tolerance; values are O(0.05) so atol dominates).
    x2d = x.reshape((-1, NUM_INPUTS))
    ref = jnp.maximum(x2d @ w1 + b1, 0.0) @ w2 + b2
    assert out.shape == (B, NUM_OUTPUTS)
    assert jnp.allclose(out, ref, atol=1e-2, rtol=1e-2), (
        float(jnp.max(jnp.abs(out - ref))))

    print("KERNEL_OK")
</pallas_src>

<mosaic_0001>
module attributes {stable_mosaic.version = 11 : i64} {
  func.func @mlp_kernel(%arg0: i32, %arg1: memref<256x784xf32, #tpu.memory_space<vmem>>, %arg2: memref<784x256xbf16, #tpu.memory_space<vmem>>, %arg3: memref<1x256xf32, #tpu.memory_space<vmem>>, %arg4: memref<256x128xf32, #tpu.memory_space<vmem>>, %arg5: memref<1x128xf32, #tpu.memory_space<vmem>>, %arg6: memref<256x128xbf16, #tpu.memory_space<vmem>>) attributes {dimension_semantics = [#tpu.dimension_semantics<parallel>], iteration_bounds = array<i64: 4>, scalar_prefetch = 0 : i64, scratch_operands = 0 : i64, tpu.core_type = #tpu.core_type<tc>, window_params = [{transform_indices = @transform_0, window_bounds = array<i64: 256, 784>}, {pipeline_mode = #tpu.pipeline_mode<synchronous>, transform_indices = @transform_1, window_bounds = array<i64: 784, 256>}, {pipeline_mode = #tpu.pipeline_mode<synchronous>, transform_indices = @transform_2, window_bounds = array<i64: 1, 256>}, {pipeline_mode = #tpu.pipeline_mode<synchronous>, transform_indices = @transform_3, window_bounds = array<i64: 256, 128>}, {pipeline_mode = #tpu.pipeline_mode<synchronous>, transform_indices = @transform_4, window_bounds = array<i64: 1, 128>}, {transform_indices = @transform_5, window_bounds = array<i64: 256, 128>}]} {
    %c0 = arith.constant 0 : index
    %c0_0 = arith.constant 0 : index
    %0 = vector.load %arg1[%c0, %c0_0] : memref<256x784xf32, #tpu.memory_space<vmem>>, vector<256x784xf32>
    %1 = arith.truncf %0 : vector<256x784xf32> to vector<256x784xbf16>
    %c0_1 = arith.constant 0 : index
    %c0_2 = arith.constant 0 : index
    %2 = vector.load %arg2[%c0_1, %c0_2] : memref<784x256xbf16, #tpu.memory_space<vmem>>, vector<784x256xbf16>
    %cst = arith.constant dense<0.000000e+00> : vector<256x256xf32>
    %3 = tpu.matmul %1, %2, %cst {dimension_numbers = #tpu.dot_dimension_numbers<[1], [0], [0], [1], [0, 0, 1, 1], [], []>} : vector<256x784xbf16>, vector<784x256xbf16>, vector<256x256xf32> -> vector<256x256xf32>
    %c0_3 = arith.constant 0 : index
    %c0_4 = arith.constant 0 : index
    %4 = vector.load %arg3[%c0_3, %c0_4] : memref<1x256xf32, #tpu.memory_space<vmem>>, vector<1x256xf32>
    %5 = vector.broadcast %4 : vector<1x256xf32> to vector<256x256xf32>
    %6 = arith.addf %3, %5 : vector<256x256xf32>
    %cst_5 = arith.constant 0.000000e+00 : f32
    %7 = vector.broadcast %cst_5 : f32 to vector<256x256xf32>
    %8 = arith.maximumf %6, %7 : vector<256x256xf32>
    %c0_6 = arith.constant 0 : index
    %c0_7 = arith.constant 0 : index
    %9 = vector.load %arg4[%c0_6, %c0_7] : memref<256x128xf32, #tpu.memory_space<vmem>>, vector<256x128xf32>
    %cst_8 = arith.constant dense<0.000000e+00> : vector<256x128xf32>
    %10 = tpu.matmul %8, %9, %cst_8 {dimension_numbers = #tpu.dot_dimension_numbers<[1], [0], [0], [1], [0, 0, 1, 1], [], []>} : vector<256x256xf32>, vector<256x128xf32>, vector<256x128xf32> -> vector<256x128xf32>
    %c0_9 = arith.constant 0 : index
    %c0_10 = arith.constant 0 : index
    %11 = vector.load %arg5[%c0_9, %c0_10] : memref<1x128xf32, #tpu.memory_space<vmem>>, vector<1x128xf32>
    %12 = vector.broadcast %11 : vector<1x128xf32> to vector<256x128xf32>
    %13 = arith.addf %10, %12 : vector<256x128xf32>
    %14 = arith.truncf %13 : vector<256x128xf32> to vector<256x128xbf16>
    %c0_11 = arith.constant 0 : index
    %c0_12 = arith.constant 0 : index
    %15 = vector.load %arg6[%c0_11, %c0_12] : memref<256x128xbf16, #tpu.memory_space<vmem>>, vector<256x128xbf16>
    tpu.vector_store %arg6[%c0_11, %c0_12], %14 {strides = array<i32>} : memref<256x128xbf16, #tpu.memory_space<vmem>>, vector<256x128xbf16>,
    return
  }
  func.func @transform_0(%arg0: i32) -> (i32, i32) {
    %c0_i32 = arith.constant 0 : i32
    %c0_i32_0 = arith.constant 0 : i32
    return %arg0, %c0_i32 : i32, i32
  }
  func.func @transform_1(%arg0: i32) -> (i32, i32) {
    %c0_i32 = arith.constant 0 : i32
    %c0_i32_0 = arith.constant 0 : i32
    %c0_i32_1 = arith.constant 0 : i32
    return %c0_i32, %c0_i32_0 : i32, i32
  }
  func.func @transform_2(%arg0: i32) -> (i32, i32) {
    %c0_i32 = arith.constant 0 : i32
    %c0_i32_0 = arith.constant 0 : i32
    %c0_i32_1 = arith.constant 0 : i32
    return %c0_i32, %c0_i32_0 : i32, i32
  }
  func.func @transform_3(%arg0: i32) -> (i32, i32) {
    %c0_i32 = arith.constant 0 : i32
    %c0_i32_0 = arith.constant 0 : i32
    %c0_i32_1 = arith.constant 0 : i32
    return %c0_i32, %c0_i32_0 : i32, i32
  }
  func.func @transform_4(%arg0: i32) -> (i32, i32) {
    %c0_i32 = arith.constant 0 : i32
    %c0_i32_0 = arith.constant 0 : i32
    %c0_i32_1 = arith.constant 0 : i32
    return %c0_i32, %c0_i32_0 : i32, i32
  }
  func.func @transform_5(%arg0: i32) -> (i32, i32) {
    %c0_i32 = arith.constant 0 : i32
    %c0_i32_0 = arith.constant 0 : i32
    return %arg0, %c0_i32 : i32, i32
  }
}

</mosaic_0001>

<bundles_post_ra>
// kernel: tpu_custom_call.1
= control target key start
LH: loop header
LB: loop body
LE: loop exit
PB: predicated region body
PF: predicated region fallthrough
CT: control target
= control target key end

     0   :  { %10 = vsyncpa [#allocation3], 0  ;;  %s4681_s0 = inlined_call_operand.vmem [shape: f32[1024,784], index: 0, kind: input, shape index: {}]   ;;  %s4682_s1 = inlined_call_operand.vmem [shape: bf16[784,256], index: 1, kind: input, shape index: {}]   ;;  %s4683_s2 = inlined_call_operand.vmem [shape: f32[1,256], index: 2, kind: input, shape index: {}]   ;;  %s4684_s3 = inlined_call_operand.vmem [shape: f32[256,128], index: 3, kind: input, shape index: {}]   ;;  %s4685_s4 = inlined_call_operand.vmem [shape: f32[1,128], index: 4, kind: input, shape index: {}]   ;;  %s4686_s5 = inlined_call_operand.hbm [shape: bf16[1024,128], index: 5, kind: output, shape index: {}]  }
   0x1   :  { %12 = vsyncpa [#allocation3 + $0x1], 0  ;;  %s3464_s18 = smov 0   ;;  %s3466_s19 = smov 0  }
   0x2   :  { %s3468_s20 = smov 0   ;;  %s3470_s21 = smov 0  }
   0x3 LB: > { %s3485_s22 = sadd.s32 4294967295, %s3427_s21   ;;  %s2551_s23 = sadd.s32 4294967294, %s3427_s21   ;;  %s3427_s21 = sphi %s3470_s21, %s4714_s21   ;;  %s3423_s20 = sphi %s3468_s20, %s4713_s20   ;;  %s3419_s19 = sphi %s3466_s19, %s4712_s19   ;;  %s3415_s18 = sphi %s3464_s18, %s4711_s18  }
   0x4   : > { %s3489_s24 = sadd.s32 1, %s3427_s21   ;;  %s135_s25 = sadd.s32 1, %s3423_s20 }
   0x5   : > { %s132_s26 = ssub.s32 %s3427_s21, %s3489_s24  ;;  %p145_p0 = scmp.ne.s32.totalorder %s3423_s20, %s3419_s19 }
   0x6   : > { %p133_p1 = scmp.eq.s32.totalorder %s132_s26, 0  ;;  %p146_p2 = scmp.eq.s32.totalorder %s3485_s22, 3 }
   0x7   : > { %p151_p3 = scmp.ne.s32.totalorder %s3419_s19, %s3415_s18  ;;  %p152_p4 = scmp.eq.s32.totalorder %s2551_s23, 3 }
   0x8   : > { %s3500_s27 = scalar_select %p133_p1, %s3423_s20, %s135_s25  }
   0x9   : > { %p3502_p5 = por %p146_p2, %p145_p0  ;;  %p3506_p6 = por %p152_p4, %p151_p3 }
   0xa   : > { %p2554_p7 = scmp.ge.s32.totalorder %s3427_s21, 1  ;;  %p192_p8 = scmp.lt.s32.totalorder %s3427_s21, 5 }
   0xc   : > { %p193_p9 = pnand %p2554_p7, %p192_p8 }
   0xe   : > { %196 = sbr.rel (%p193_p9) target bundleno = 851 (0x353), region = 40 }
  0x15   : > { %v3515_v0 = vld [vmem:[%s4682_s1 + $0x104] ss:$8 sps:$4 sm:$0xff]   ;;  %v3520_v1 = vld [vmem:[%s4682_s1 + $0x100] ss:$8 sps:$4 sm:$0xff]   ;;  %v3526_v2 = vld [vmem:[%s4682_s1 + $0x114] ss:$8 sps:$4 sm:$0xff]  }
  0x16   : > { %1408 = vmatprep.subr.bf16.mxu0 %v3515_v0  ;;  %v3532_v3 = vld [vmem:[%s4682_s1 + $0x110] ss:$8 sps:$4 sm:$0xff]   ;;  %v3538_v4 = vld [vmem:[%s4682_s1 + $0x124] ss:$8 sps:$4 sm:$0xff]   ;;  %s2556_s15 = sshll.u32 %s3485_s22, 5  ;;  %vm1166_vm0 = vcmask 130048  }
  0x17   : > { %1409 = vmatpush1.bf16.msra.mxu0 %v3520_v1  ;;  %v3545_v5 = vld [vmem:[%s4682_s1 + $0x120] ss:$8 sps:$4 sm:$0xff]   ;;  %p222_p10 = scmp.lt.s32.totalorder %s2556_s15, 127  ;;  %v3551_v6 = vld [vmem:[%s4682_s1 + $0x134] ss:$8 sps:$4 sm:$0xff]   ;;  %s218_s14 = sand.u32 1, %s3419_s19  }
  0x18   : > { %1410 = vmatprep.subr.bf16.mxu0 %v3526_v2  ;;  %v3557_v7 = vld [vmem:[%s4682_s1 + $0x130] ss:$8 sps:$4 sm:$0xff]   ;;  %v3563_v8 = vld [vmem:[%s4682_s1 + $0x144] ss:$8 sps:$4 sm:$0xff]   ;;  %v3569_v9 = vld [vmem:[%s4682_s1 + $0x140] ss:$8 sps:$4 sm:$0xff]  }
  0x19   : > { %s4716_s15 = smov (!%p222_p10, %s2556_s15), 127  ;;  %v3575_v10 = vld [vmem:[%s4682_s1 + $0x154] ss:$8 sps:$4 sm:$0xff]   ;;  %v3581_v11 = vld [vmem:[%s4682_s1 + $0x150] ss:$8 sps:$4 sm:$0xff]   ;;  %s2742_s26 = sshll.u32 %s3485_s22, 11 }
  0x1a   : > { %s3174_s10 = smul.u32 56, %s4716_s15  ;;  %v3586_v12 = vld [vmem:[%s4682_s1 + $0x164] ss:$8 sps:$4 sm:$0xff]   ;;  %v3600_v14 = vld [vmem:[%s4682_s1 + $0x160] ss:$8 sps:$4 sm:$0xff]   ;;  %s2555_s15 = sshll.u32 %s218_s14, 7 }
  0x1b   : > { %1411 = vmatpush1.bf16.msra.mxu0 %v3532_v3  ;;  %v3263_v13 = vld [vmem:[%s4682_s1 + $0x4] ss:$8 sps:$4 sm:$0xff]   ;;  %v3267_v15 = vld [vmem:[%s4682_s1] ss:$8 sps:$4 sm:$0xff]   ;;  %v3612_v18 = vld [vmem:[%s4682_s1 + $0x174] ss:$8 sps:$4 sm:$0xff]   ;;  %s4633_s8 = scalar_lea.hbm %s4686_s5, %s2742_s26 }
  0x1c   : > { %1412 = vmatprep.subr.bf16.mxu0 %v3538_v4  ;;  %s3591_s25 = scalar_lea.vmem %s4681_s0, %s3174_s10  ;;  %1215 = vmatprep.subr.bf16.mxu1 %v3263_v13  ;;  %v3269_v20 = vld [vmem:[%s4682_s1 + $0x14] ss:$8 sps:$4 sm:$0xff]   ;;  %v3620_v21 = vld [vmem:[%s4682_s1 + $0x170] ss:$8 sps:$4 sm:$0xff]   ;;  %v3275_v23 = vld [vmem:[%s4682_s1 + $0x24] ss:$8 sps:$4 sm:$0xff]  }
  0x1d   : > { %v233_v16 = vld [vmem:[%s3591_s25 + $0x18] sm:$0xff]  ;;  %v240_v17 = vld [vmem:[%s3591_s25 + $0x50] sm:$0xff]  ;;  %1216 = vmatpush1.bf16.msra.mxu1 %v3267_v15  ;;  %v3633_v24 = vld [vmem:[%s4682_s1 + $0x184] ss:$8 sps:$4 sm:$0xff]   ;;  %s4581_s23 = scalar_lea.vmem [#allocation2], %s2555_s15  ;;  %s4640_s22 = scalar_lea.sflag [#allocation3], %s218_s14 }
  0x1e   : > { %v457_v19 = vpack.c.bf16 %v240_v17, %v233_v16  ;;  %1217 = vmatprep.subr.bf16.mxu1 %v3269_v20  ;;  %v3274_v22 = vld [vmem:[%s4682_s1 + $0x10] ss:$8 sps:$4 sm:$0xff]   ;;  %v3280_v25 = vld [vmem:[%s4682_s1 + $0x20] ss:$8 sps:$4 sm:$0xff]   ;;  %v3281_v26 = vld [vmem:[%s4682_s1 + $0x34] ss:$8 sps:$4 sm:$0xff]  }
  0x1f   : > { %1413 = vmatpush1.bf16.msra.mxu0 %v3545_v5  ;;  %v3645_v27 = vld [vmem:[%s4682_s1 + $0x180] ss:$8 sps:$4 sm:$0xff]   ;;  %v3651_v28 = vld [vmem:[%s4682_s1 + $0x194] ss:$8 sps:$4 sm:$0xff]   ;;  %v3286_v29 = vld [vmem:[%s4682_s1 + $0x30] ss:$8 sps:$4 sm:$0xff]  }
  0x20   : > { %1414 = vmatprep.subr.bf16.mxu0 %v3551_v6  ;;  %1440 = vmatprep.mubr.bf16.mxu0 %v457_v19  ;;  %v3287_v30 = vld [vmem:[%s4682_s1 + $0x44] ss:$8 sps:$4 sm:$0xff]   ;;  %v3663_v31 = vld [vmem:[%s4682_s1 + $0x190] ss:$8 sps:$4 sm:$0xff]   ;;  %v3292_v33 = vld [vmem:[%s4682_s1 + $0x40] ss:$8 sps:$4 sm:$0xff]  }
  0x21   : > { %1218 = vmatpush1.bf16.msra.mxu1 %v3274_v22  ;;  %v3669_v32 = vld [vmem:[%s4682_s1 + $0x1a4] ss:$8 sps:$4 sm:$0xff]   ;;  %v3293_v34 = vld [vmem:[%s4682_s1 + $0x54] ss:$8 sps:$4 sm:$0xff]   ;;  %v3681_v35 = vld [vmem:[%s4682_s1 + $0x1a0] ss:$8 sps:$4 sm:$0xff]  }
  0x22   : > { %1219 = vmatprep.subr.bf16.mxu1 %v3275_v23  ;;  %v3686_v36 = vld [vmem:[%s4682_s1 + $0x1b4] ss:$8 sps:$4 sm:$0xff]   ;;  %v3298_v37 = vld [vmem:[%s4682_s1 + $0x50] ss:$8 sps:$4 sm:$0xff]   ;;  %v3299_v38 = vld [vmem:[%s4682_s1 + $0x64] ss:$8 sps:$4 sm:$0xff]  }
  0x23   : > { %1415 = vmatpush1.bf16.msra.mxu0 %v3557_v7  ;;  %v3699_v39 = vld [vmem:[%s4682_s1 + $0x1b0] ss:$8 sps:$4 sm:$0xff]   ;;  %v3705_v40 = vld [vmem:[%s4682_s1 + $0x1c4] ss:$8 sps:$4 sm:$0xff]   ;;  %v3304_v41 = vld [vmem:[%s4682_s1 + $0x60] ss:$8 sps:$4 sm:$0xff]  }
  0x24   : > { %1416 = vmatprep.subr.bf16.mxu0 %v3563_v8  ;;  %v3305_v42 = vld [vmem:[%s4682_s1 + $0x74] ss:$8 sps:$4 sm:$0xff]   ;;  %v3717_v43 = vld [vmem:[%s4682_s1 + $0x1c0] ss:$8 sps:$4 sm:$0xff]   ;;  %v3310_v45 = vld [vmem:[%s4682_s1 + $0x70] ss:$8 sps:$4 sm:$0xff]  }
  0x25   : > { %1220 = vmatpush1.bf16.msra.mxu1 %v3280_v25  ;;  %v3723_v44 = vld [vmem:[%s4682_s1 + $0x1d4] ss:$8 sps:$4 sm:$0xff]   ;;  %v3311_v46 = vld [vmem:[%s4682_s1 + $0x84] ss:$8 sps:$4 sm:$0xff]   ;;  %v3735_v47 = vld [vmem:[%s4682_s1 + $0x1d0] ss:$8 sps:$4 sm:$0xff]  }
  0x26   : > { %1221 = vmatprep.subr.bf16.mxu1 %v3281_v26  ;;  %v3741_v48 = vld [vmem:[%s4682_s1 + $0x1e4] ss:$8 sps:$4 sm:$0xff]   ;;  %v3316_v49 = vld [vmem:[%s4682_s1 + $0x80] ss:$8 sps:$4 sm:$0xff]   ;;  %v3317_v50 = vld [vmem:[%s4682_s1 + $0x94] ss:$8 sps:$4 sm:$0xff]  }
  0x27   : > { %1417 = vmatpush1.bf16.msra.mxu0 %v3569_v9  ;;  %v3753_v51 = vld [vmem:[%s4682_s1 + $0x1e0] ss:$8 sps:$4 sm:$0xff]   ;;  %v3759_v52 = vld [vmem:[%s4682_s1 + $0x1f4] ss:$8 sps:$4 sm:$0xff]   ;;  %v3322_v53 = vld [vmem:[%s4682_s1 + $0x90] ss:$8 sps:$4 sm:$0xff]  }
  0x28   : > { %1418 = vmatprep.subr.bf16.mxu0 %v3575_v10  ;;  %v3767_v54 = vld [vmem:[%s4682_s1 + $0x1f0] ss:$8 sps:$4 sm:$0xff]   ;;  %v3323_v56 = vld [vmem:[%s4682_s1 + $0xa4] ss:$8 sps:$4 sm:$0xff]   ;;  %v3328_v61 = vld [vmem:[%s4682_s1 + $0xa0] ss:$8 sps:$4 sm:$0xff]  }
  0x29   : > { %1222 = vmatpush1.bf16.msra.mxu1 %v3286_v29  ;;  %v232_v55 = vld [vmem:[%s3591_s25 + $0x10] sm:$0xff]  ;;  %v239_v57 = vld [vmem:[%s3591_s25 + $0x48] sm:$0xff]  ;;  %v254_v60 = vld [vmem:[%s3591_s25 + $0xc0] sm:$0xff]  ;;  %s2489_s30 = sshll.u32 %s4581_s23, 4  ;;  %s3431_s10 = smov [#allocation2]   ;;  %s4635_s30 = int_to_ptr.vmem [resolvable:$true] %s2489_s30 }
  0x2a   : > { %1223 = vmatprep.subr.bf16.mxu1 %v3287_v30  ;;  %v3273_v58 = vld [vmem:[%s4682_s1 + $0x204] ss:$8 sps:$4 sm:$0xff]   ;;  %v3329_v62 = vld [vmem:[%s4682_s1 + $0xb4] ss:$8 sps:$4 sm:$0xff]   ;;  %v456_v63 = vpack.c.bf16 %v239_v57, %v232_v55  ;;  %v3271_v13 = vld [vmem:[%s4682_s1 + $0x200] ss:$8 sps:$4 sm:$0xff]  }
  0x2b   : > { %1419 = vmatpush1.bf16.msra.mxu0 %v3581_v11  ;;  %v247_v59 = vld [vmem:[%s3591_s25 + $0x88] sm:$0xff]  ;;  %v3279_v16 = vld [vmem:[%s4682_s1 + $0x214] ss:$8 sps:$4 sm:$0xff]   ;;  %v3334_v17 = vld [vmem:[%s4682_s1 + $0xb0] ss:$8 sps:$4 sm:$0xff]   ;;  %s3365_s9 = scalar_lea.vmem %s4635_s30, 2048 }
  0x2c   : > { %1420 = vmatprep.subr.bf16.mxu0 %v3586_v12  ;;  %v464_v15 = vpack.c.bf16 %v254_v60, %v247_v59  ;;  %v3277_v19 = vld [vmem:[%s4682_s1 + $0x210] ss:$8 sps:$4 sm:$0xff]   ;;  %v246_v20 = vld [vmem:[%s3591_s25 + $0x80] sm:$0xff]  ;;  %p3366_p11 = scmp.ne.s32.totalorder %s4635_s30, %s3365_s9  ;;  %s3369_s11 = sshll.u32 %s3431_s10, 4  ;;  %s3370_s11 = int_to_ptr.vmem [resolvable:$false] %s3369_s11 }
  0x2d   : > { %1224 = vmatpush1.bf16.msra.mxu1 %v3292_v33  ;;  %v3335_v22 = vld [vmem:[%s4682_s1 + $0xc4] ss:$8 sps:$4 sm:$0xff]   ;;  %v253_v23 = vld [vmem:[%s3591_s25 + $0xb8] sm:$0xff]  ;;  %v268_v29 = vld [vmem:[%s3591_s25 + $0x130] sm:$0xff]  ;;  %s3371_s12 = scalar_lea.vmem %s3370_s11, 4096  ;;  %p3372_p0 = scmp.lt.s32.totalorder %s4635_s30, %s3370_s11 }
  0x2e   : > { %1225 = vmatprep.subr.bf16.mxu1 %v3293_v34  ;;  %v3285_v25 = vld [vmem:[%s4682_s1 + $0x224] ss:$8 sps:$4 sm:$0xff]   ;;  %v261_v26 = vld [vmem:[%s3591_s25 + $0xf8] sm:$0xff]  ;;  %v3340_v30 = vld [vmem:[%s4682_s1 + $0xc0] ss:$8 sps:$4 sm:$0xff]   ;;  %v463_v34 = vpack.c.bf16 %v253_v23, %v246_v20  ;;  %p3367_p12 = pnand %p3366_p11, %p3502_p5  ;;  %p3373_p1 = scmp.lt.s32.totalorder %s3371_s12, %s3365_s9 }
  0x2f   : > { %1421 = vmatpush1.bf16.msra.mxu0 %v3600_v14  ;;  %v3341_v33 = vld [vmem:[%s4682_s1 + $0xd4] ss:$8 sps:$4 sm:$0xff]   ;;  %v3297_v57 = vld [vmem:[%s4682_s1 + $0x244] ss:$8 sps:$4 sm:$0xff]   ;;  %v3352_v60 = vld [vmem:[%s4682_s1 + $0xe0] ss:$8 sps:$4 sm:$0xff]  }
  0x30   : > { %1422 = vmatprep.subr.bf16.mxu0 %v3612_v18  ;;  %v282_v59 = vld [vmem:[%s3591_s25 + $0x1a0] sm:$0xff]  ;;  %v245_v20 = vld [vmem:[%s3591_s25 + $0x78] sm:$0xff]  ;;  %p3368_p13 = pneg %p3367_p12  ;;  %p3374_p2 = por %p3373_p1, %p3372_p0 }
  0x31   : > { %1226 = vmatpush1.bf16.msra.mxu1 %v3298_v37  ;;  %v3283_v37 = vld [vmem:[%s4682_s1 + $0x220] ss:$8 sps:$4 sm:$0xff]   ;;  %v3301_v23 = vld [vmem:[%s4682_s1 + $0x250] ss:$8 sps:$4 sm:$0xff]  }
  0x32   : > { %1227 = vmatprep.subr.bf16.mxu1 %v3299_v38  ;;  %v471_v38 = vpack.c.bf16 %v268_v29, %v261_v26  ;;  %v281_v26 = vld [vmem:[%s3591_s25 + $0x198] sm:$0xff]  ;;  %p3375_p3 = pnand %p3374_p2, %p3368_p13 }
  0x33   : > { %1423 = vmatpush1.bf16.msra.mxu0 %v3620_v21 }
  0x34   : > { %1424 = vmatprep.subr.bf16.mxu0 %v3633_v24 }
  0x35   : > { %1228 = vmatpush1.bf16.msra.mxu1 %v3304_v41  ;;  %v3291_v41 = vld [vmem:[%s4682_s1 + $0x234] ss:$8 sps:$4 sm:$0xff]  }
  0x36   : > { %1229 = vmatprep.subr.bf16.mxu1 %v3305_v42  ;;  %v3346_v42 = vld [vmem:[%s4682_s1 + $0xd0] ss:$8 sps:$4 sm:$0xff]  }
  0x37   : > { %1425 = vmatpush1.bf16.msra.mxu0 %v3645_v27 }
  0x38   : > { %1426 = vmatprep.subr.bf16.mxu0 %v3651_v28 }
  0x39   : > { %1230 = vmatpush1.bf16.msra.mxu1 %v3310_v45  ;;  %v3347_v45 = vld [vmem:[%s4682_s1 + $0xe4] ss:$8 sps:$4 sm:$0xff]  }
  0x3a   : > { %1231 = vmatprep.subr.bf16.mxu1 %v3311_v46  ;;  %v231_v46 = vld [vmem:[%s3591_s25 + $0x8] sm:$0xff] }
  0x3b   : > { %1427 = vmatpush1.bf16.msra.mxu0 %v3663_v31 }
  0x3c   : > { %1428 = vmatprep.subr.bf16.mxu0 %v3669_v32 }
  0x3d   : > { %1232 = vmatpush1.bf16.msra.mxu1 %v3316_v49  ;;  %v238_v49 = vld [vmem:[%s3591_s25 + $0x40] sm:$0xff] }
  0x3e   : > { %1233 = vmatprep.subr.bf16.mxu1 %v3317_v50  ;;  %v3289_v50 = vld [vmem:[%s4682_s1 + $0x230] ss:$8 sps:$4 sm:$0xff]   ;;  %v455_v55 = vpack.c.bf16 %v238_v49, %v231_v46  ;;  %v259_v49 = vld [vmem:[%s3591_s25 + $0xe8] sm:$0xff] }
  0x3f   : > { %1429 = vmatpush1.bf16.msra.mxu0 %v3681_v35  ;;  %v244_v46 = vld [vmem:[%s3591_s25 + $0x70] sm:$0xff] }
  0x40   : > { %1430 = vmatprep.subr.bf16.mxu0 %v3686_v36  ;;  %1247 = vmatprep.mubr.bf16.mxu1 %v455_v55  ;;  %v288_v55 = vld [vmem:[%s3591_s25 + $0x1d0] sm:$0xff] }
  0x41   : > { %1234 = vmatpush1.bf16.msra.mxu1 %v3322_v53  ;;  %v260_v53 = vld [vmem:[%s3591_s25 + $0xf0] sm:$0xff] }
  0x42   : > { %1235 = vmatprep.subr.bf16.mxu1 %v3323_v56  ;;  %v267_v56 = vld [vmem:[%s3591_s25 + $0x128] sm:$0xff] }
  0x43   : > { %1431 = vmatpush1.bf16.msra.mxu0 %v3699_v39 }
  0x44   : > { %1432 = vmatprep.subr.bf16.mxu0 %v3705_v40 }
  0x45   : > { %1236 = vmatpush1.bf16.msra.mxu1 %v3328_v61  ;;  %v3353_v61 = vld [vmem:[%s4682_s1 + $0xf4] ss:$8 sps:$4 sm:$0xff]  }
  0x46   : > { %1237 = vmatprep.subr.bf16.mxu1 %v3329_v62  ;;  %v470_v62 = vpack.c.bf16 %v267_v56, %v260_v53  ;;  %v3313_v53 = vld [vmem:[%s4682_s1 + $0x270] ss:$8 sps:$4 sm:$0xff]   ;;  %v295_v56 = vld [vmem:[%s3591_s25 + $0x208] sm:$0xff] }
  0x47   : > { %1433 = vmatpush1.bf16.msra.mxu0 %v3717_v43 }
  0x48   : > { %1434 = vmatprep.subr.bf16.mxu0 %v3723_v44 }
  0x49   : > { %1238 = vmatpush1.bf16.msra.mxu1 %v3334_v17  ;;  %v230_v17 = vld [vmem:[%s3591_s25] sm:$0xff] }
  0x4a   : > { %1239 = vmatprep.subr.bf16.mxu1 %v3335_v22  ;;  %v252_v22 = vld [vmem:[%s3591_s25 + $0xb0] sm:$0xff] }
  0x4b   : > { %1435 = vmatpush1.bf16.msra.mxu0 %v3735_v47 }
  0x4c   : > { %1436 = vmatprep.subr.bf16.mxu0 %v3741_v48 }
  0x4d   : > { %1240 = vmatpush1.bf16.msra.mxu1 %v3340_v30  ;;  %v3309_v30 = vld [vmem:[%s4682_s1 + $0x264] ss:$8 sps:$4 sm:$0xff]  }
  0x4e   : > { %1241 = vmatprep.subr.bf16.mxu1 %v3341_v33  ;;  %v289_v33 = vld [vmem:[%s3591_s25 + $0x1d8] sm:$0xff] }
  0x4f   : > { %1437 = vmatpush1.bf16.msra.mxu0 %v3753_v51 }
  0x50   : > { %1438 = vmatprep.subr.bf16.mxu0 %v3759_v52 }
  0x51   : > { %1242 = vmatpush1.bf16.msra.mxu1 %v3346_v42 }
  0x52   : > { %1243 = vmatprep.subr.bf16.mxu1 %v3347_v45  ;;  %v3315_v45 = vld [vmem:[%s4682_s1 + $0x274] ss:$8 sps:$4 sm:$0xff]  }
  0x53   : > { %1439 = vmatpush1.bf16.msra.mxu0 %v3767_v54 }
  0x54   : > { %1601 = vmatprep.subr.bf16.mxu0 %v3273_v58  ;;  %v275_v58 = vld [vmem:[%s3591_s25 + $0x168] sm:$0xff] }
  0x55   : > { %1244 = vmatpush1.bf16.msra.mxu1 %v3352_v60  ;;  %v484_v60 = vpack.c.bf16 %v295_v56, %v288_v55  ;;  %v293_v55 = vld [vmem:[%s3591_s25 + $0x1f8] sm:$0xff]  ;;  %v308_v56 = vld [vmem:[%s3591_s25 + $0x270] sm:$0xff] }
  0x56   : > { %1441 = vmatmul.mubr.bf16.vlgmr.msra.gmra.mrb[0].mxu0 %v456_v63  ;;  %v3295_v63 = vld [vmem:[%s4682_s1 + $0x240] ss:$8 sps:$4 sm:$0xff]   ;;  %1245 = vmatprep.subr.bf16.mxu1 %v3353_v61 }
  0x57   : > { %1602 = vmatpush1.bf16.msra.mxu0 %v3271_v13  ;;  %1450 = vmatprep.mubr.bf16.mxu0 %v464_v15  ;;  %v3303_v13 = vld [vmem:[%s4682_s1 + $0x254] ss:$8 sps:$4 sm:$0xff]   ;;  %v478_v15 = vpack.c.bf16 %v282_v59, %v275_v58  ;;  %v3321_v58 = vld [vmem:[%s4682_s1 + $0x284] ss:$8 sps:$4 sm:$0xff]   ;;  %v3319_v61 = vld [vmem:[%s4682_s1 + $0x280] ss:$8 sps:$4 sm:$0xff]  }
  0x58   : > { %1603 = vmatprep.subr.bf16.mxu0 %v3279_v16  ;;  %v3358_v16 = vld [vmem:[%s4682_s1 + $0xf0] ss:$8 sps:$4 sm:$0xff]  }
  0x59   : > { %1246 = vmatpush1.bf16.msra.mxu1 %v3358_v16  ;;  %v3325_v16 = vld [vmem:[%s4682_s1 + $0x290] ss:$8 sps:$4 sm:$0xff]  }
  0x5a   : > { %2886 = vmatprep.subr.bf16.mxu1 %v3515_v0  ;;  %v251_v0 = vld [vmem:[%s3591_s25 + $0xa8] sm:$0xff] }
  0x5b   : > { %1604 = vmatpush1.bf16.msra.mxu0 %v3277_v19  ;;  %v237_v19 = vld [vmem:[%s3591_s25 + $0x38] sm:$0xff] }
  0x5c   : > { %1605 = vmatprep.subr.bf16.mxu0 %v3285_v25  ;;  %v274_v25 = vld [vmem:[%s3591_s25 + $0x160] sm:$0xff]  ;;  %v454_v29 = vpack.c.bf16 %v237_v19, %v230_v17  ;;  %v309_v19 = vld [vmem:[%s3591_s25 + $0x278] sm:$0xff] }
  0x5d   : > { %v302_v17 = vld [vmem:[%s3591_s25 + $0x240] sm:$0xff] }
  0x5e   : > { %1451 = vmatmul.mubr.bf16.gmra.mrb[4].mxu0 %v463_v34  ;;  %v296_v34 = vld [vmem:[%s3591_s25 + $0x210] sm:$0xff]  ;;  %1248 = vmatmul.mubr.bf16.vlgmr.msra.gmra.mrb[0].mxu1 %v454_v29 }
  0x5f   : > { %1606 = vmatpush1.bf16.msra.mxu0 %v3283_v37  ;;  %1460 = vmatprep.mubr.bf16.mxu0 %v471_v38  ;;  %v462_v37 = vpack.c.bf16 %v252_v22, %v245_v20  ;;  %v477_v38 = vpack.c.bf16 %v281_v26, %v274_v25  ;;  %v485_v42 = vpack.c.bf16 %v296_v34, %v289_v33  ;;  %v3333_v22 = vld [vmem:[%s4682_s1 + $0x2a4] ss:$8 sps:$4 sm:$0xff]   ;;  %v3331_v26 = vld [vmem:[%s4682_s1 + $0x2a0] ss:$8 sps:$4 sm:$0xff]  }
  0x60   : > { %1607 = vmatprep.subr.bf16.mxu0 %v3291_v41  ;;  %v3307_v41 = vld [vmem:[%s4682_s1 + $0x260] ss:$8 sps:$4 sm:$0xff]   ;;  %2902 = vmatpush1.bf16.msra.mxu1 %v3520_v1  ;;  %v491_v25 = vpack.c.bf16 %v309_v19, %v302_v17  ;;  %v241_v17 = vld [vmem:[%s3591_s25 + $0x58] sm:$0xff] }
  0x61   : > { %1257 = vmatprep.mubr.bf16.mxu1 %v462_v37  ;;  %2887 = vmatprep.subr.bf16.mxu1 %v3526_v2  ;;  %v303_v1 = vld [vmem:[%s3591_s25 + $0x248] sm:$0xff]  ;;  %v310_v2 = vld [vmem:[%s3591_s25 + $0x280] sm:$0xff]  ;;  %v3337_v37 = vld [vmem:[%s4682_s1 + $0x2b0] ss:$8 sps:$4 sm:$0xff]  }
  0x62   : > { %v279_v33 = vld [vmem:[%s3591_s25 + $0x188] sm:$0xff]  ;;  %v294_v34 = vld [vmem:[%s3591_s25 + $0x200] sm:$0xff] }
  0x63   : > { %1608 = vmatpush1.bf16.msra.mxu0 %v3289_v50  ;;  %v266_v50 = vld [vmem:[%s3591_s25 + $0x120] sm:$0xff] }
  0x64   : > { %1609 = vmatprep.subr.bf16.mxu0 %v3297_v57  ;;  %v461_v57 = vpack.c.bf16 %v251_v0, %v244_v46  ;;  %v469_v59 = vpack.c.bf16 %v266_v50, %v259_v49  ;;  %2903 = vmatpush1.bf16.msra.mxu1 %v3532_v3  ;;  %v258_v3 = vld [vmem:[%s3591_s25 + $0xe0] sm:$0xff] }
  0x65   : > { %2888 = vmatprep.subr.bf16.mxu1 %v3538_v4  ;;  %v273_v4 = vld [vmem:[%s3591_s25 + $0x158] sm:$0xff]  ;;  %v3343_v49 = vld [vmem:[%s4682_s1 + $0x2c0] ss:$8 sps:$4 sm:$0xff]  }
  0x66   : > { %1461 = vmatmul.mubr.bf16.gmra.mrb[8].mxu0 %v470_v62  ;;  %v492_v62 = vpack.c.bf16 %v310_v2, %v303_v1  ;;  %1258 = vmatmul.mubr.bf16.gmra.mrb[4].mxu1 %v461_v57  ;;  %v3349_v57 = vld [vmem:[%s4682_s1 + $0x2d0] ss:$8 sps:$4 sm:$0xff]  }
  0x67   : > { %1610 = vmatpush1.bf16.msra.mxu0 %v3295_v63  ;;  %1470 = vmatprep.mubr.bf16.mxu0 %v478_v15  ;;  %v3327_v63 = vld [vmem:[%s4682_s1 + $0x294] ss:$8 sps:$4 sm:$0xff]  }
  0x68   : > { %1611 = vmatprep.subr.bf16.mxu0 %v3303_v13  ;;  %1267 = vmatprep.mubr.bf16.mxu1 %v469_v59  ;;  %v265_v13 = vld [vmem:[%s3591_s25 + $0x118] sm:$0xff]  ;;  %v280_v15 = vld [vmem:[%s3591_s25 + $0x190] sm:$0xff]  ;;  %v3357_v59 = vld [vmem:[%s4682_s1 + $0x2e4] ss:$8 sps:$4 sm:$0xff]  }
  0x69   : > { %2904 = vmatpush1.bf16.msra.mxu1 %v3545_v5  ;;  %v468_v20 = vpack.c.bf16 %v265_v13, %v258_v3  ;;  %v317_v5 = vld [vmem:[%s3591_s25 + $0x2b8] sm:$0xff]  ;;  %v307_v13 = vld [vmem:[%s3591_s25 + $0x268] sm:$0xff] }
  0x6a   : > { %2889 = vmatprep.subr.bf16.mxu1 %v3551_v6  ;;  %v324_v6 = vld [vmem:[%s3591_s25 + $0x2f0] sm:$0xff]  ;;  %v337_v1 = vld [vmem:[%s3591_s25 + $0x358] sm:$0xff] }
  0x6b   : > { %1612 = vmatpush1.bf16.msra.mxu0 %v3301_v23  ;;  %v476_v23 = vpack.c.bf16 %v280_v15, %v273_v4  ;;  %v499_v29 = vpack.c.bf16 %v324_v6, %v317_v5  ;;  %v3361_v3 = vld [vmem:[%s4682_s1 + $0x2f4] ss:$8 sps:$4 sm:$0xff]   ;;  %v322_v4 = vld [vmem:[%s3591_s25 + $0x2e0] sm:$0xff]  ;;  %v3359_v15 = vld [vmem:[%s4682_s1 + $0x2f0] ss:$8 sps:$4 sm:$0xff]  }
  0x6c   : > { %1613 = vmatprep.subr.bf16.mxu0 %v3309_v30  ;;  %v3339_v30 = vld [vmem:[%s4682_s1 + $0x2b4] ss:$8 sps:$4 sm:$0xff]   ;;  %v3362_v6 = vld [vmem:[%s4682_s1 + $0x300] ss:$8 sps:$4 sm:$0xff]  }
  0x6d   : > { %2905 = vmatpush1.bf16.msra.mxu1 %v3557_v7  ;;  %v272_v7 = vld [vmem:[%s3591_s25 + $0x150] sm:$0xff] }
  0x6e   : > { %1471 = vmatmul.mubr.bf16.gmra.mrb[12].mxu0 %v477_v38  ;;  %2890 = vmatprep.subr.bf16.mxu1 %v3563_v8  ;;  %v287_v8 = vld [vmem:[%s3591_s25 + $0x1c8] sm:$0xff]  ;;  %v316_v38 = vld [vmem:[%s3591_s25 + $0x2b0] sm:$0xff] }
  0x6f   : > { %1614 = vmatpush1.bf16.msra.mxu0 %v3307_v41  ;;  %1480 = vmatprep.mubr.bf16.mxu0 %v485_v42  ;;  %v323_v41 = vld [vmem:[%s3591_s25 + $0x2e8] sm:$0xff]  ;;  %v475_v42 = vpack.c.bf16 %v279_v33, %v272_v7  ;;  %v483_v46 = vpack.c.bf16 %v294_v34, %v287_v8  ;;  %v270_v8 = vld [vmem:[%s3591_s25 + $0x140] sm:$0xff] }
  0x70   : > { %1615 = vmatprep.subr.bf16.mxu0 %v3315_v45  ;;  %1268 = vmatmul.mubr.bf16.gmra.mrb[8].mxu1 %v468_v20  ;;  %v3345_v45 = vld [vmem:[%s4682_s1 + $0x2c4] ss:$8 sps:$4 sm:$0xff]   ;;  %v498_v0 = vpack.c.bf16 %v323_v41, %v316_v38  ;;  %v249_v20 = vld [vmem:[%s3591_s25 + $0x98] sm:$0xff] }
  0x71   : > { %1277 = vmatprep.mubr.bf16.mxu1 %v476_v23  ;;  %2906 = vmatpush1.bf16.msra.mxu1 %v3569_v9  ;;  %v331_v9 = vld [vmem:[%s3591_s25 + $0x328] sm:$0xff] }
  0x72   : > { %2891 = vmatprep.subr.bf16.mxu1 %v3575_v10  ;;  %v338_v10 = vld [vmem:[%s3591_s25 + $0x360] sm:$0xff]  ;;  %v263_v33 = vld [vmem:[%s3591_s25 + $0x108] sm:$0xff] }
  0x73   : > { %1616 = vmatpush1.bf16.msra.mxu0 %v3313_v53  ;;  %v506_v50 = vpack.c.bf16 %v338_v10, %v331_v9  ;;  %v3351_v53 = vld [vmem:[%s4682_s1 + $0x2d4] ss:$8 sps:$4 sm:$0xff]   ;;  %v335_v38 = vld [vmem:[%s3591_s25 + $0x348] sm:$0xff] }
  0x74   : > { %1617 = vmatprep.subr.bf16.mxu0 %v3321_v58  ;;  %v330_v58 = vld [vmem:[%s3591_s25 + $0x320] sm:$0xff]  ;;  %v343_v41 = vld [vmem:[%s3591_s25 + $0x388] sm:$0xff]  ;;  %v277_v9 = vld [vmem:[%s3591_s25 + $0x178] sm:$0xff] }
  0x75   : > { %2907 = vmatpush1.bf16.msra.mxu1 %v3581_v11  ;;  %v286_v11 = vld [vmem:[%s3591_s25 + $0x1c0] sm:$0xff]  ;;  %v284_v10 = vld [vmem:[%s3591_s25 + $0x1b0] sm:$0xff] }
  0x76   : > { %1481 = vmatmul.mubr.bf16.gmra.mrb[16].mxu0 %v484_v60  ;;  %2892 = vmatprep.subr.bf16.mxu1 %v3586_v12  ;;  %v301_v12 = vld [vmem:[%s3591_s25 + $0x238] sm:$0xff]  ;;  %v482_v2 = vpack.c.bf16 %v293_v55, %v286_v11  ;;  %v291_v55 = vld [vmem:[%s3591_s25 + $0x1e8] sm:$0xff] }
  0x77   : > { %1618 = vmatpush1.bf16.msra.mxu0 %v3319_v61  ;;  %1490 = vmatprep.mubr.bf16.mxu0 %v492_v62  ;;  %v490_v60 = vpack.c.bf16 %v308_v56, %v301_v12  ;;  %v505_v61 = vpack.c.bf16 %v337_v1, %v330_v58  ;;  %v3355_v62 = vld [vmem:[%s4682_s1 + $0x2e0] ss:$8 sps:$4 sm:$0xff]   ;;  %v356_v58 = vld [vmem:[%s3591_s25 + $0x3f0] sm:$0xff] }
  0x78   : > { %1619 = vmatprep.subr.bf16.mxu0 %v3327_v63  ;;  %1278 = vmatmul.mubr.bf16.gmra.mrb[12].mxu1 %v475_v42  ;;  %v350_v42 = vld [vmem:[%s3591_s25 + $0x3c0] sm:$0xff]  ;;  %v371_v1 = vld [vmem:[%s3591_s25 + $0x468] sm:$0xff] }
  0x79   : > { %1287 = vmatprep.mubr.bf16.mxu1 %v483_v46  ;;  %2908 = vmatpush1.bf16.msra.mxu1 %v3600_v14  ;;  %v235_v14 = vld [vmem:[%s3591_s25 + $0x28] sm:$0xff]  ;;  %v511_v46 = vpack.c.bf16 %v350_v42, %v343_v41  ;;  %v298_v12 = vld [vmem:[%s3591_s25 + $0x220] sm:$0xff] }
  0x7a   : > { %2893 = vmatprep.subr.bf16.mxu1 %v3612_v18  ;;  %v242_v18 = vld [vmem:[%s3591_s25 + $0x60] sm:$0xff]  ;;  %v347_v42 = vld [vmem:[%s3591_s25 + $0x3a8] sm:$0xff] }
  0x7b   : > { %1620 = vmatpush1.bf16.msra.mxu0 %v3325_v16  ;;  %v459_v63 = vpack.c.bf16 %v242_v18, %v235_v14  ;;  %v234_v16 = vld [vmem:[%s3591_s25 + $0x20] sm:$0xff]  ;;  %v297_v14 = vld [vmem:[%s3591_s25 + $0x218] sm:$0xff] }
  0x7c   : > { %1621 = vmatprep.subr.bf16.mxu0 %v3333_v22  ;;  %v458_v5 = vpack.c.bf16 %v241_v17, %v234_v16  ;;  %v319_v17 = vld [vmem:[%s3591_s25 + $0x2c8] sm:$0xff] }
  0x7d   : > { %2909 = vmatpush1.bf16.msra.mxu1 %v3620_v21  ;;  %v300_v21 = vld [vmem:[%s3591_s25 + $0x230] sm:$0xff] }
  0x7e   : > { %1491 = vmatmul.mubr.bf16.gmra.mrb[20].mxu0 %v491_v25  ;;  %2894 = vmatprep.subr.bf16.mxu1 %v3633_v24  ;;  %v315_v24 = vld [vmem:[%s3591_s25 + $0x2a8] sm:$0xff]  ;;  %v489_v19 = vpack.c.bf16 %v307_v13, %v300_v21  ;;  %v314_v25 = vld [vmem:[%s3591_s25 + $0x2a0] sm:$0xff]  ;;  %v377_v21 = vld [vmem:[%s3591_s25 + $0x498] sm:$0xff] }
  0x7f   : > { %1622 = vmatpush1.bf16.msra.mxu0 %v3331_v26  ;;  %1500 = vmatprep.mubr.bf16.mxu0 %v499_v29  ;;  %v497_v22 = vpack.c.bf16 %v322_v4, %v315_v24  ;;  %v321_v26 = vld [vmem:[%s3591_s25 + $0x2d8] sm:$0xff]  ;;  %v392_v24 = vld [vmem:[%s3591_s25 + $0x510] sm:$0xff] }
  0x80   : > { %1623 = vmatprep.subr.bf16.mxu0 %v3339_v30  ;;  %1288 = vmatmul.mubr.bf16.gmra.mrb[16].mxu1 %v482_v2  ;;  %v329_v29 = vld [vmem:[%s3591_s25 + $0x318] sm:$0xff]  ;;  %v255_v30 = vld [vmem:[%s3591_s25 + $0xc8] sm:$0xff]  ;;  %v496_v7 = vpack.c.bf16 %v321_v26, %v314_v25  ;;  %v378_v2 = vld [vmem:[%s3591_s25 + $0x4a0] sm:$0xff] }
  0x81   : > { %1297 = vmatprep.mubr.bf16.mxu1 %v490_v60  ;;  %2910 = vmatpush1.bf16.msra.mxu1 %v3645_v27  ;;  %v3364_v27 = vld [vmem:[%s4682_s1 + $0x304] ss:$8 sps:$4 sm:$0xff]   ;;  %v312_v60 = vld [vmem:[%s3591_s25 + $0x290] sm:$0xff]  ;;  %v385_v13 = vld [vmem:[%s3591_s25 + $0x4d8] sm:$0xff] }
  0x82   : > { %2895 = vmatprep.subr.bf16.mxu1 %v3651_v28  ;;  %v256_v28 = vld [vmem:[%s3591_s25 + $0xd0] sm:$0xff]  ;;  %v318_v25 = vld [vmem:[%s3591_s25 + $0x2c0] sm:$0xff]  ;;  %v325_v26 = vld [vmem:[%s3591_s25 + $0x2f8] sm:$0xff] }
  0x83   : > { %1624 = vmatpush1.bf16.msra.mxu0 %v3337_v37  ;;  %v466_v23 = vpack.c.bf16 %v256_v28, %v249_v20  ;;  %v328_v37 = vld [vmem:[%s3591_s25 + $0x310] sm:$0xff] }
  0x84   : > { %1625 = vmatprep.subr.bf16.mxu0 %v3345_v45  ;;  %v503_v45 = vpack.c.bf16 %v335_v38, %v328_v37  ;;  %v304_v4 = vld [vmem:[%s3591_s25 + $0x250] sm:$0xff]  ;;  %v339_v38 = vld [vmem:[%s3591_s25 + $0x368] sm:$0xff] }
  0x85   : > { %2911 = vmatpush1.bf16.msra.mxu1 %v3663_v31  ;;  %v336_v31 = vld [vmem:[%s3591_s25 + $0x350] sm:$0xff] }
  0x86   : > { %1501 = vmatmul.mubr.bf16.gmra.mrb[24].mxu0 %v498_v0  ;;  %2896 = vmatprep.subr.bf16.mxu1 %v3669_v32  ;;  %v248_v32 = vld [vmem:[%s3591_s25 + $0x90] sm:$0xff]  ;;  %v504_v34 = vpack.c.bf16 %v336_v31, %v329_v29  ;;  %v333_v31 = vld [vmem:[%s3591_s25 + $0x338] sm:$0xff] }
  0x87   : > { %1626 = vmatpush1.bf16.msra.mxu0 %v3343_v49  ;;  %1510 = vmatprep.mubr.bf16.mxu0 %v506_v50  ;;  %v349_v49 = vld [vmem:[%s3591_s25 + $0x3b8] sm:$0xff]  ;;  %v332_v37 = vld [vmem:[%s3591_s25 + $0x330] sm:$0xff] }
  0x88   : > { %1627 = vmatprep.subr.bf16.mxu0 %v3351_v53  ;;  %1298 = vmatmul.mubr.bf16.gmra.mrb[20].mxu1 %v489_v19  ;;  %v357_v50 = vld [vmem:[%s3591_s25 + $0x3f8] sm:$0xff]  ;;  %v364_v53 = vld [vmem:[%s3591_s25 + $0x430] sm:$0xff]  ;;  %v326_v19 = vld [vmem:[%s3591_s25 + $0x300] sm:$0xff] }
  0x89   : > { %1307 = vmatprep.mubr.bf16.mxu1 %v497_v22  ;;  %2912 = vmatpush1.bf16.msra.mxu1 %v3681_v35  ;;  %v465_v35 = vpack.c.bf16 %v255_v30, %v248_v32  ;;  %v518_v56 = vpack.c.bf16 %v364_v53, %v357_v50  ;;  %v501_v28 = vpack.c.bf16 %v326_v19, %v319_v17  ;;  %v384_v22 = vld [vmem:[%s3591_s25 + $0x4d0] sm:$0xff]  ;;  %v361_v53 = vld [vmem:[%s3591_s25 + $0x418] sm:$0xff] }
  0x8a   : > { %2897 = vmatprep.subr.bf16.mxu1 %v3686_v36  ;;  %v473_v36 = vpack.c.bf16 %v270_v8, %v263_v33  ;;  %v340_v32 = vld [vmem:[%s3591_s25 + $0x370] sm:$0xff]  ;;  %v398_v8 = vld [vmem:[%s3591_s25 + $0x540] sm:$0xff] }
  0x8b   : > { %1628 = vmatpush1.bf16.msra.mxu0 %v3349_v57  ;;  %v487_v57 = vpack.c.bf16 %v298_v12, %v291_v55  ;;  %v508_v33 = vpack.c.bf16 %v340_v32, %v333_v31  ;;  %v426_v12 = vld [vmem:[%s3591_s25 + $0x620] sm:$0xff]  ;;  %v344_v19 = vld [vmem:[%s3591_s25 + $0x390] sm:$0xff] }
  0x8c   : > { %1629 = vmatprep.subr.bf16.mxu0 %v3357_v59  ;;  %v290_v59 = vld [vmem:[%s3591_s25 + $0x1e0] sm:$0xff] }
  0x8d   : > { %2913 = vmatpush1.bf16.msra.mxu1 %v3699_v39  ;;  %v262_v39 = vld [vmem:[%s3591_s25 + $0x100] sm:$0xff] }
  0x8e   : > { %1511 = vmatmul.mubr.bf16.gmra.mrb[28].mxu0 %v505_v61  ;;  %2898 = vmatprep.subr.bf16.mxu1 %v3705_v40  ;;  %v269_v40 = vld [vmem:[%s3591_s25 + $0x138] sm:$0xff]  ;;  %v525_v61 = vpack.c.bf16 %v378_v2, %v371_v1  ;;  %v375_v2 = vld [vmem:[%s3591_s25 + $0x488] sm:$0xff]  ;;  %v358_v32 = vld [vmem:[%s3591_s25 + $0x400] sm:$0xff] }
  0x8f   : > { %1630 = vmatpush1.bf16.msra.mxu0 %v3355_v62  ;;  %1633 = vmatprep.mubr.bf16.mxu0 %v459_v63  ;;  %v472_v0 = vpack.c.bf16 %v269_v40, %v262_v39  ;;  %v486_v62 = vpack.c.bf16 %v297_v14, %v290_v59  ;;  %v354_v39 = vld [vmem:[%s3591_s25 + $0x3e0] sm:$0xff] }
  0x90   : > { %1631 = vmatprep.subr.bf16.mxu0 %v3361_v3  ;;  %1308 = vmatmul.mubr.bf16.gmra.mrb[24].mxu1 %v496_v7  ;;  %v370_v3 = vld [vmem:[%s3591_s25 + $0x460] sm:$0xff]  ;;  %v500_v7 = vpack.c.bf16 %v325_v26, %v318_v25 }
  0x91   : > { %1317 = vmatprep.mubr.bf16.mxu1 %v504_v34  ;;  %2914 = vmatpush1.bf16.msra.mxu1 %v3717_v43  ;;  %v480_v43 = vpack.c.bf16 %v284_v10, %v277_v9  ;;  %v524_v16 = vpack.c.bf16 %v377_v21, %v370_v3  ;;  %v405_v34 = vld [vmem:[%s3591_s25 + $0x578] sm:$0xff]  ;;  %v515_v9 = vpack.c.bf16 %v354_v39, %v347_v42  ;;  %v412_v10 = vld [vmem:[%s3591_s25 + $0x5b0] sm:$0xff]  ;;  %v382_v59 = vld [vmem:[%s3591_s25 + $0x4c0] sm:$0xff] }
  0x92   : > { %2899 = vmatprep.subr.bf16.mxu1 %v3723_v44  ;;  %v342_v44 = vld [vmem:[%s3591_s25 + $0x380] sm:$0xff]  ;;  %v538_v41 = vpack.c.bf16 %v405_v34, %v398_v8  ;;  %v381_v21 = vld [vmem:[%s3591_s25 + $0x4b8] sm:$0xff]  ;;  %v372_v39 = vld [vmem:[%s3591_s25 + $0x470] sm:$0xff] }
  0x93   : > { %1632 = vmatpush1.bf16.msra.mxu0 %v3359_v15  ;;  %v510_v11 = vpack.c.bf16 %v349_v49, %v342_v44  ;;  %v311_v15 = vld [vmem:[%s3591_s25 + $0x288] sm:$0xff]  ;;  %v346_v44 = vld [vmem:[%s3591_s25 + $0x3a0] sm:$0xff]  ;;  %v353_v49 = vld [vmem:[%s3591_s25 + $0x3d8] sm:$0xff] }
  0x94   : > { %1794 = vmatprep.subr.bf16.mxu0 %v3364_v27  ;;  %v532_v27 = vpack.c.bf16 %v392_v24, %v385_v13  ;;  %v493_v20 = vpack.c.bf16 %v311_v15, %v304_v4  ;;  %v374_v3 = vld [vmem:[%s3591_s25 + $0x480] sm:$0xff]  ;;  %v389_v24 = vld [vmem:[%s3591_s25 + $0x4f8] sm:$0xff]  ;;  %v396_v4 = vld [vmem:[%s3591_s25 + $0x530] sm:$0xff] }
  0x95   : > { %2915 = vmatpush1.bf16.msra.mxu1 %v3735_v47  ;;  %v276_v47 = vld [vmem:[%s3591_s25 + $0x170] sm:$0xff]  ;;  %v536_v17 = vpack.c.bf16 %v396_v4, %v389_v24  ;;  %v410_v25 = vld [vmem:[%s3591_s25 + $0x5a0] sm:$0xff]  ;;  %v409_v34 = vld [vmem:[%s3591_s25 + $0x598] sm:$0xff] }
  0x96   : > { %1634 = vmatmul.mubr.bf16.vlgmr.msra.gmra.mrb[0].mxu0 %v458_v5  ;;  %2900 = vmatprep.subr.bf16.mxu1 %v3741_v48  ;;  %v283_v48 = vld [vmem:[%s3591_s25 + $0x1a8] sm:$0xff]  ;;  %v402_v8 = vld [vmem:[%s3591_s25 + $0x560] sm:$0xff]  ;;  %v429_v24 = vld [vmem:[%s3591_s25 + $0x638] sm:$0xff] }
  0x97   : > { %1795 = vmatpush1.bf16.msra.mxu0 %v3362_v6  ;;  %1643 = vmatprep.mubr.bf16.mxu0 %v466_v23  ;;  %v391_v5 = vld [vmem:[%s3591_s25 + $0x508] sm:$0xff]  ;;  %v406_v23 = vld [vmem:[%s3591_s25 + $0x580] sm:$0xff]  ;;  %v436_v4 = vld [vmem:[%s3591_s25 + $0x670] sm:$0xff] }
  0x98   : > { %1318 = vmatmul.mubr.bf16.gmra.mrb[28].mxu1 %v503_v45  ;;  %v399_v6 = vld [vmem:[%s3591_s25 + $0x548] sm:$0xff]  ;;  %v531_v29 = vpack.c.bf16 %v391_v5, %v384_v22  ;;  %v507_v45 = vpack.c.bf16 %v339_v38, %v332_v37  ;;  %v388_v22 = vld [vmem:[%s3591_s25 + $0x4f0] sm:$0xff] }
  0x99   : > { %1327 = vmatprep.mubr.bf16.mxu1 %v511_v46  ;;  %2916 = vmatpush1.bf16.msra.mxu1 %v3753_v51  ;;  %v479_v51 = vpack.c.bf16 %v283_v48, %v276_v47  ;;  %v539_v30 = vpack.c.bf16 %v406_v23, %v399_v6  ;;  %v419_v46 = vld [vmem:[%s3591_s25 + $0x5e8] sm:$0xff]  ;;  %v368_v47 = vld [vmem:[%s3591_s25 + $0x450] sm:$0xff] }
  0x9a   : > { %2901 = vmatprep.subr.bf16.mxu1 %v3759_v52  ;;  %v363_v52 = vld [vmem:[%s3591_s25 + $0x428] sm:$0xff]  ;;  %v545_v50 = vpack.c.bf16 %v419_v46, %v412_v10  ;;  %v522_v55 = vpack.c.bf16 %v368_v47, %v361_v53  ;;  %v424_v37 = vld [vmem:[%s3591_s25 + $0x610] sm:$0xff]  ;;  %v386_v47 = vld [vmem:[%s3591_s25 + $0x4e0] sm:$0xff] }
  0x9b   : > { %v517_v18 = vpack.c.bf16 %v363_v52, %v356_v58  ;;  %v360_v58 = vld [vmem:[%s3591_s25 + $0x410] sm:$0xff]  ;;  %v367_v52 = vld [vmem:[%s3591_s25 + $0x448] sm:$0xff] }
  0x9c   : > { %v395_v5 = vld [vmem:[%s3591_s25 + $0x528] sm:$0xff]  ;;  %v416_v10 = vld [vmem:[%s3591_s25 + $0x5d0] sm:$0xff] }
  0x9d   : > { %2917 = vmatpush1.bf16.msra.mxu1 %v3767_v54  ;;  %v305_v54 = vld [vmem:[%s3591_s25 + $0x258] sm:$0xff]  ;;  %v403_v23 = vld [vmem:[%s3591_s25 + $0x568] sm:$0xff] }
  0x9e   : > { %1644 = vmatmul.mubr.bf16.gmra.mrb[4].mxu0 %v465_v35  ;;  %v494_v63 = vpack.c.bf16 %v312_v60, %v305_v54  ;;  %v413_v35 = vld [vmem:[%s3591_s25 + $0x5b8] sm:$0xff]  ;;  %v529_v54 = vpack.c.bf16 %v382_v59, %v375_v2  ;;  %v440_v60 = vld [vmem:[%s3591_s25 + $0x690] sm:$0xff]  ;;  %v543_v31 = vpack.c.bf16 %v410_v25, %v403_v23  ;;  %v423_v46 = vld [vmem:[%s3591_s25 + $0x608] sm:$0xff]  ;;  %v555_v23 = vpack.c.bf16 %v436_v4, %v429_v24 }
  0x9f   : > { %1653 = vmatprep.mubr.bf16.mxu0 %v473_v36  ;;  %v420_v36 = vld [vmem:[%s3591_s25 + $0x5f0] sm:$0xff]  ;;  %v2074_v24 = vld [vmem:[%s4684_s3 + $0xb8] sm:$0xff]  ;;  %v306_v4 = vld [vmem:[%s3591_s25 + $0x260] sm:$0xff] }
  0xa0   : > { %1328 = vmatmul.mubr.bf16.gmra.mrb[32].mxu1 %v510_v11  ;;  %v546_v40 = vpack.c.bf16 %v420_v36, %v413_v35  ;;  %v514_v11 = vpack.c.bf16 %v353_v49, %v346_v44  ;;  %v417_v36 = vld [vmem:[%s3591_s25 + $0x5d8] sm:$0xff]  ;;  %v438_v44 = vld [vmem:[%s3591_s25 + $0x680] sm:$0xff]  ;;  %v400_v59 = vld [vmem:[%s3591_s25 + $0x550] sm:$0xff] }
  0xa1   : > { %1337 = vmatprep.mubr.bf16.mxu1 %v518_v56  ;;  %v433_v56 = vld [vmem:[%s3591_s25 + $0x658] sm:$0xff]  ;;  %v550_v42 = vpack.c.bf16 %v424_v37, %v417_v36  ;;  %v250_v36 = vld [vmem:[%s3591_s25 + $0xa0] sm:$0xff] }
  0xa2   : > { %v552_v1 = vpack.c.bf16 %v433_v56, %v426_v12  ;;  %v430_v12 = vld [vmem:[%s3591_s25 + $0x640] sm:$0xff]  ;;  %v437_v56 = vld [vmem:[%s3591_s25 + $0x678] sm:$0xff] }
  0xa3   : > { %v257_v37 = vld [vmem:[%s3591_s25 + $0xd8] sm:$0xff] }
  0xa6   : > { %1654 = vmatmul.mubr.bf16.gmra.mrb[8].mxu0 %v472_v0  ;;  %v427_v0 = vld [vmem:[%s3591_s25 + $0x628] sm:$0xff] }
  0xa7   : > { %1663 = vmatprep.mubr.bf16.mxu0 %v480_v43  ;;  %v434_v43 = vld [vmem:[%s3591_s25 + $0x660] sm:$0xff] }
  0xa8   : > { %1338 = vmatmul.mubr.bf16.gmra.mrb[36].mxu1 %v517_v18  ;;  %v553_v48 = vpack.c.bf16 %v434_v43, %v427_v0  ;;  %v521_v18 = vpack.c.bf16 %v367_v52, %v360_v58  ;;  %v431_v43 = vld [vmem:[%s3591_s25 + $0x648] sm:$0xff]  ;;  %v452_v58 = vld [vmem:[%s3591_s25 + $0x6f0] sm:$0xff] }
  0xa9   : > { %1347 = vmatprep.mubr.bf16.mxu1 %v525_v61  ;;  %v447_v61 = vld [vmem:[%s3591_s25 + $0x6c8] sm:$0xff]  ;;  %v557_v53 = vpack.c.bf16 %v438_v44, %v431_v43  ;;  %v2062_v43 = vld [vmem:[%s4684_s3 + $0x58] sm:$0xff]  ;;  %v264_v44 = vld [vmem:[%s3591_s25 + $0x110] sm:$0xff] }
  0xaa   : > { %v559_v13 = vpack.c.bf16 %v447_v61, %v440_v60  ;;  %v444_v60 = vld [vmem:[%s3591_s25 + $0x6b0] sm:$0xff]  ;;  %v451_v61 = vld [vmem:[%s3591_s25 + $0x6e8] sm:$0xff] }
  0xae   : > { %1664 = vmatmul.mubr.bf16.gmra.mrb[12].mxu0 %v479_v51  ;;  %v441_v51 = vld [vmem:[%s3591_s25 + $0x698] sm:$0xff] }
  0xaf   : > { %1673 = vmatprep.mubr.bf16.mxu0 %v487_v57  ;;  %v448_v57 = vld [vmem:[%s3591_s25 + $0x6d0] sm:$0xff] }
  0xb0   : > { %1348 = vmatmul.mubr.bf16.gmra.mrb[40].mxu1 %v524_v16  ;;  %v560_v14 = vpack.c.bf16 %v448_v57, %v441_v51  ;;  %v528_v16 = vpack.c.bf16 %v381_v21, %v374_v3  ;;  %v445_v57 = vld [vmem:[%s3591_s25 + $0x6b8] sm:$0xff]  ;;  %v563_v3 = vpack.c.bf16 %v451_v61, %v444_v60  ;;  %v414_v21 = vld [vmem:[%s3591_s25 + $0x5c0] sm:$0xff]  ;;  %v299_v60 = vld [vmem:[%s3591_s25 + $0x228] sm:$0xff] }
  0xb1   : > { %1357 = vmatprep.mubr.bf16.mxu1 %v532_v27  ;;  %v351_v27 = vld [vmem:[%s3591_s25 + $0x3c8] sm:$0xff]  ;;  %v564_v2 = vpack.c.bf16 %v452_v58, %v445_v57  ;;  %v285_v57 = vld [vmem:[%s3591_s25 + $0x1b8] sm:$0xff] }
  0xb2   : > { %v512_v6 = vpack.c.bf16 %v351_v27, %v344_v19  ;;  %v3429_v19 = vmov 0   ;;  %v243_v27 = vld [vmem:[%s3591_s25 + $0x68] sm:$0xff] }
  0xb6   : > { %1674 = vmatmul.mubr.bf16.gmra.mrb[16].mxu0 %v486_v62  ;;  %v345_v62 = vld [vmem:[%s3591_s25 + $0x398] sm:$0xff] }
  0xb7   : > { %1683 = vmatprep.mubr.bf16.mxu0 %v494_v63  ;;  %v352_v63 = vld [vmem:[%s3591_s25 + $0x3d0] sm:$0xff] }
  0xb8   : > { %1358 = vmatmul.mubr.bf16.gmra.mrb[44].mxu1 %v531_v29  ;;  %v513_v15 = vpack.c.bf16 %v352_v63, %v345_v62  ;;  %v535_v29 = vpack.c.bf16 %v395_v5, %v388_v22  ;;  %v2053_v5 = vld [vmem:[%s4684_s3 + $0x10] sm:$0xff] }
  0xb9   : > { %1367 = vmatprep.mubr.bf16.mxu1 %v539_v30  ;;  %v365_v30 = vld [vmem:[%s3591_s25 + $0x438] sm:$0xff] }
  0xba   : > { %v519_v35 = vpack.c.bf16 %v365_v30, %v358_v32  ;;  %v428_v32 = vld [vmem:[%s3591_s25 + $0x630] sm:$0xff]  ;;  %v435_v30 = vld [vmem:[%s3591_s25 + $0x668] sm:$0xff] }
  0xbe   : > { %1684 = vmatmul.mubr.bf16.gmra.mrb[20].mxu0 %v493_v20  ;;  %v359_v20 = vld [vmem:[%s3591_s25 + $0x408] sm:$0xff] }
  0xbf   : > { %1693 = vmatprep.mubr.bf16.mxu0 %v501_v28  ;;  %v366_v28 = vld [vmem:[%s3591_s25 + $0x440] sm:$0xff] }
  0xc0   : > { %1368 = vmatmul.mubr.bf16.gmra.mrb[48].mxu1 %v538_v41  ;;  %v520_v26 = vpack.c.bf16 %v366_v28, %v359_v20  ;;  %v542_v41 = vpack.c.bf16 %v409_v34, %v402_v8  ;;  %v3430_v28 = vmov 0.0|0.0   ;;  %v2057_v34 = vld [vmem:[%s4684_s3 + $0x30] sm:$0xff] }
  0xc1   : > { %1377 = vmatprep.mubr.bf16.mxu1 %v546_v40  ;;  %v379_v40 = vld [vmem:[%s3591_s25 + $0x4a8] sm:$0xff]  ;;  %2838 = vmatprep.subr.bf16.mxu1 %v3430_v28 }
  0xc2   : > { %v526_v0 = vpack.c.bf16 %v379_v40, %v372_v39  ;;  %v467_v39 = vpack.c.bf16 %v257_v37, %v250_v36  ;;  %v2059_v40 = vld [vmem:[%s4684_s3 + $0x40] sm:$0xff] }
  0xc6   : > { %1694 = vmatmul.mubr.bf16.gmra.mrb[24].mxu0 %v500_v7  ;;  %v373_v7 = vld [vmem:[%s3591_s25 + $0x478] sm:$0xff] }
  0xc7   : > { %1703 = vmatprep.mubr.bf16.mxu0 %v508_v33  ;;  %v380_v33 = vld [vmem:[%s3591_s25 + $0x4b0] sm:$0xff] }
  0xc8   : > { %1378 = vmatmul.mubr.bf16.gmra.mrb[52].mxu1 %v545_v50  ;;  %v527_v38 = vpack.c.bf16 %v380_v33, %v373_v7  ;;  %v549_v50 = vpack.c.bf16 %v423_v46, %v416_v10  ;;  %v443_v7 = vld [vmem:[%s3591_s25 + $0x6a8] sm:$0xff]  ;;  %v450_v33 = vld [vmem:[%s3591_s25 + $0x6e0] sm:$0xff]  ;;  %v449_v10 = vld [vmem:[%s3591_s25 + $0x6d8] sm:$0xff] }
  0xc9   : > { %1387 = vmatprep.mubr.bf16.mxu1 %v553_v48  ;;  %v393_v48 = vld [vmem:[%s3591_s25 + $0x518] sm:$0xff] }
  0xca   : > { %v533_v51 = vpack.c.bf16 %v393_v48, %v386_v47  ;;  %v2063_v48 = vld [vmem:[%s4684_s3 + $0x60] sm:$0xff] }
  0xce   : > { %1704 = vmatmul.mubr.bf16.gmra.mrb[28].mxu0 %v507_v45  ;;  %v387_v45 = vld [vmem:[%s3591_s25 + $0x4e8] sm:$0xff] }
  0xcf   : > { %1713 = vmatprep.mubr.bf16.mxu0 %v515_v9  ;;  %v394_v9 = vld [vmem:[%s3591_s25 + $0x520] sm:$0xff] }
  0xd0   : > { %1388 = vmatmul.mubr.bf16.gmra.mrb[56].mxu1 %v552_v1  ;;  %v534_v49 = vpack.c.bf16 %v394_v9, %v387_v45  ;;  %v556_v1 = vpack.c.bf16 %v437_v56, %v430_v12  ;;  %v2060_v45 = vld [vmem:[%s4684_s3 + $0x48] sm:$0xff]  ;;  %v442_v9 = vld [vmem:[%s3591_s25 + $0x6a0] sm:$0xff]  ;;  %v2065_v12 = vld [vmem:[%s4684_s3 + $0x70] sm:$0xff] }
  0xd1   : > { %1397 = vmatprep.mubr.bf16.mxu1 %v560_v14  ;;  %v407_v14 = vld [vmem:[%s3591_s25 + $0x588] sm:$0xff]  ;;  %v2851_v46 = vpack.c.bf16 %v2060_v45, %v2059_v40  ;;  %v2066_v56 = vld [vmem:[%s4684_s3 + $0x78] sm:$0xff] }
  0xd2   : > { %v540_v62 = vpack.c.bf16 %v407_v14, %v400_v59  ;;  %v2860_v58 = vpack.c.bf16 %v2066_v56, %v2065_v12  ;;  %v2069_v14 = vld [vmem:[%s4684_s3 + $0x90] sm:$0xff] }
  0xd6   : > { %1714 = vmatmul.mubr.bf16.gmra.mrb[32].mxu0 %v514_v11  ;;  %v401_v11 = vld [vmem:[%s3591_s25 + $0x558] sm:$0xff] }
  0xd7   : > { %1723 = vmatprep.mubr.bf16.mxu0 %v522_v55  ;;  %v408_v55 = vld [vmem:[%s3591_s25 + $0x590] sm:$0xff] }
  0xd8   : > { %1398 = vmatmul.mubr.bf16.gmra.mrb[60].mxu1 %v559_v13  ;;  %v541_v52 = vpack.c.bf16 %v408_v55, %v401_v11  ;;  %v421_v13 = vld [vmem:[%s3591_s25 + $0x5f8] sm:$0xff]  ;;  %v2064_v11 = vld [vmem:[%s4684_s3 + $0x68] sm:$0xff] }
  0xd9   : > { %1520 = vmatprep.mubr.bf16.mxu1 %v513_v15  ;;  %v236_v15 = vld [vmem:[%s3591_s25 + $0x30] sm:$0xff]  ;;  %v547_v20 = vpack.c.bf16 %v421_v13, %v414_v21  ;;  %v2857_v55 = vpack.c.bf16 %v2064_v11, %v2063_v48  ;;  %v383_v11 = vld [vmem:[%s3591_s25 + $0x4c8] sm:$0xff] }
  0xda   : > { %v2073_v13 = vld [vmem:[%s4684_s3 + $0xb0] sm:$0xff] }
  0xdb   : > { %v376_v48 = vld [vmem:[%s3591_s25 + $0x490] sm:$0xff] }
  0xde   : > { %1724 = vmatmul.mubr.bf16.gmra.mrb[36].mxu0 %v521_v18  ;;  %v415_v18 = vld [vmem:[%s3591_s25 + $0x5c8] sm:$0xff] }
  0xdf   : > { %1733 = vmatprep.mubr.bf16.mxu0 %v529_v54  ;;  %v422_v54 = vld [vmem:[%s3591_s25 + $0x600] sm:$0xff] }
  0xe0   : > { %1521 = vmatmul.mubr.bf16.vlgmr.msra.gmra.mrb[32].mxu1 %v512_v6  ;;  %v548_v63 = vpack.c.bf16 %v422_v54, %v415_v18  ;;  %v2054_v6 = vld [vmem:[%s4684_s3 + $0x18] sm:$0xff]  ;;  %v292_v54 = vld [vmem:[%s3591_s25 + $0x1f0] sm:$0xff] }
  0xe1   : > { %1530 = vmatprep.mubr.bf16.mxu1 %v520_v26  ;;  %v2842_v25 = vpack.c.bf16 %v2054_v6, %v2053_v5  ;;  %v460_v26 = vpack.c.bf16 %v243_v27, %v236_v15  ;;  %v2070_v18 = vld [vmem:[%s4684_s3 + $0x98] sm:$0xff]  ;;  %v2075_v27 = vld [vmem:[%s4684_s3 + $0xc0] sm:$0xff]  ;;  %v320_v5 = vld [vmem:[%s3591_s25 + $0x2d0] sm:$0xff] }
  0xe2   : > { %v2866_v61 = vpack.c.bf16 %v2070_v18, %v2069_v14  ;;  %v313_v15 = vld [vmem:[%s3591_s25 + $0x298] sm:$0xff] }
  0xe6   : > { %1734 = vmatmul.mubr.bf16.gmra.mrb[40].mxu0 %v528_v16  ;;  %v2051_v16 = vld [vmem:[%s4684_s3] sm:$0xff] }
  0xe7   : > { %1743 = vmatprep.mubr.bf16.mxu0 %v536_v17  ;;  %v2052_v17 = vld [vmem:[%s4684_s3 + $0x8] sm:$0xff] }
  0xe8   : > { %1531 = vmatmul.mubr.bf16.gmra.mrb[36].mxu1 %v519_v35  ;;  %v2839_v22 = vpack.c.bf16 %v2052_v17, %v2051_v16  ;;  %v2058_v35 = vld [vmem:[%s4684_s3 + $0x38] sm:$0xff]  ;;  %v2872_v16 = vpack.c.bf16 %v2074_v24, %v2073_v13  ;;  %v495_v17 = vpack.c.bf16 %v313_v15, %v306_v4 }
  0xe9   : > { %1540 = vmatprep.mubr.bf16.mxu1 %v527_v38  ;;  %v554_v38 = vpack.c.bf16 %v435_v30, %v428_v32 }
  0xea   : > { %2840 = vmatpush1.bf16.msra.mxu1 %v2839_v22 }
  0xeb   : > { %2841 = vmatprep.subr.bf16.mxu1 %v3430_v28 }
  0xee   : > { %1744 = vmatmul.mubr.bf16.gmra.mrb[44].mxu0 %v535_v29  ;;  %v2055_v29 = vld [vmem:[%s4684_s3 + $0x20] sm:$0xff]  ;;  %2843 = vmatpush1.bf16.msra.mxu1 %v2842_v25 }
  0xef   : > { %1753 = vmatprep.mubr.bf16.mxu0 %v543_v31  ;;  %v2056_v31 = vld [vmem:[%s4684_s3 + $0x28] sm:$0xff]  ;;  %2844 = vmatprep.subr.bf16.mxu1 %v3430_v28 }
  0xf0   : > { %1541 = vmatmul.mubr.bf16.gmra.mrb[40].mxu1 %v526_v0  ;;  %v2845_v8 = vpack.c.bf16 %v2056_v31, %v2055_v29  ;;  %v2061_v0 = vld [vmem:[%s4684_s3 + $0x50] sm:$0xff]  ;;  %v2078_v29 = vld [vmem:[%s4684_s3 + $0xd8] sm:$0xff] }
  0xf1   : > { %1550 = vmatprep.mubr.bf16.mxu1 %v534_v49  ;;  %v271_v49 = vld [vmem:[%s3591_s25 + $0x148] sm:$0xff] }
  0xf2   : > { %2846 = vmatpush1.bf16.msra.mxu1 %v2845_v8  ;;  %v474_v47 = vpack.c.bf16 %v271_v49, %v264_v44  ;;  %v334_v8 = vld [vmem:[%s3591_s25 + $0x340] sm:$0xff] }
  0xf3   : > { %2847 = vmatprep.subr.bf16.mxu1 %v3430_v28 }
  0xf6   : > { %1754 = vmatmul.mubr.bf16.gmra.mrb[48].mxu0 %v542_v41  ;;  %v562_v41 = vpack.c.bf16 %v450_v33, %v443_v7 }
  0xf7   : > { %1763 = vmatprep.mubr.bf16.mxu0 %v550_v42  ;;  %v2848_v42 = vpack.c.bf16 %v2058_v35, %v2057_v34  ;;  %v341_v34 = vld [vmem:[%s3591_s25 + $0x378] sm:$0xff] }
  0xf8   : > { %1551 = vmatmul.mubr.bf16.gmra.mrb[44].mxu1 %v533_v51  ;;  %v278_v51 = vld [vmem:[%s3591_s25 + $0x180] sm:$0xff] }
  0xf9   : > { %1560 = vmatprep.mubr.bf16.mxu1 %v541_v52  ;;  %2849 = vmatpush1.bf16.msra.mxu1 %v2848_v42  ;;  %v481_v52 = vpack.c.bf16 %v285_v57, %v278_v51  ;;  %v348_v42 = vld [vmem:[%s3591_s25 + $0x3b0] sm:$0xff]  ;;  %v530_v51 = vpack.c.bf16 %v383_v11, %v376_v48 }
  0xfa   : > { %2850 = vmatprep.subr.bf16.mxu1 %v3430_v28 }
  0xfd   : > { %2852 = vmatpush1.bf16.msra.mxu1 %v2851_v46 }
  0xfe   : > { %1764 = vmatmul.mubr.bf16.gmra.mrb[52].mxu0 %v549_v50  ;;  %v561_v50 = vpack.c.bf16 %v449_v10, %v442_v9  ;;  %2853 = vmatprep.subr.bf16.mxu1 %v3430_v28 }
  0xff   : > { %1773 = vmatprep.mubr.bf16.mxu0 %v557_v53  ;;  %v2854_v53 = vpack.c.bf16 %v2062_v43, %v2061_v0  ;;  %v362_v0 = vld [vmem:[%s3591_s25 + $0x420] sm:$0xff]  ;;  %v369_v43 = vld [vmem:[%s3591_s25 + $0x458] sm:$0xff] }
 0x100   : > { %1561 = vmatmul.mubr.bf16.gmra.mrb[48].mxu1 %v540_v62  ;;  %v488_v62 = vpack.c.bf16 %v299_v60, %v292_v54 }
 0x101   : > { %1570 = vmatprep.mubr.bf16.mxu1 %v548_v63  ;;  %2855 = vmatpush1.bf16.msra.mxu1 %v2854_v53  ;;  %v2071_v63 = vld [vmem:[%s4684_s3 + $0xa0] sm:$0xff]  ;;  %v523_v53 = vpack.c.bf16 %v369_v43, %v362_v0 }
 0x102   : > { %2856 = vmatprep.subr.bf16.mxu1 %v3430_v28 }
 0x105   : > { %2858 = vmatpush1.bf16.msra.mxu1 %v2857_v55 }
 0x106   : > { %1774 = vmatmul.mubr.bf16.gmra.mrb[56].mxu0 %v556_v1  ;;  %2859 = vmatprep.subr.bf16.mxu1 %v3430_v28  ;;  %v2067_v1 = vld [vmem:[%s4684_s3 + $0x80] sm:$0xff] }
 0x107   : > { %1783 = vmatprep.mubr.bf16.mxu0 %v564_v2  ;;  %v2068_v2 = vld [vmem:[%s4684_s3 + $0x88] sm:$0xff] }
 0x108   : > { %1571 = vmatmul.mubr.bf16.gmra.mrb[52].mxu1 %v547_v20  ;;  %v2863_v59 = vpack.c.bf16 %v2068_v2, %v2067_v1  ;;  %v2076_v20 = vld [vmem:[%s4684_s3 + $0xc8] sm:$0xff]  ;;  %v390_v1 = vld [vmem:[%s3591_s25 + $0x500] sm:$0xff]  ;;  %v397_v2 = vld [vmem:[%s3591_s25 + $0x538] sm:$0xff] }
 0x109   : > { %1580 = vmatprep.mubr.bf16.mxu1 %v555_v23  ;;  %2861 = vmatpush1.bf16.msra.mxu1 %v2860_v58  ;;  %v2875_v22 = vpack.c.bf16 %v2076_v20, %v2075_v27  ;;  %v327_v23 = vld [vmem:[%s3591_s25 + $0x308] sm:$0xff]  ;;  %v2079_v58 = vld [vmem:[%s4684_s3 + $0xe0] sm:$0xff]  ;;  %v537_v60 = vpack.c.bf16 %v397_v2, %v390_v1  ;;  %v425_v27 = vld [vmem:[%s3591_s25 + $0x618] sm:$0xff]  ;;  %v666_v2 = vlaneseq }
 0x10a   : > { %2862 = vmatprep.subr.bf16.mxu1 %v3430_v28  ;;  %v502_v7 = vpack.c.bf16 %v327_v23, %v320_v5 }
 0x10d   : > { %2864 = vmatpush1.bf16.msra.mxu1 %v2863_v59 }
 0x10e   : > { %1784 = vmatmul.mubr.bf16.gmra.mrb[60].mxu0 %v563_v3  ;;  %2865 = vmatprep.subr.bf16.mxu1 %v3430_v28  ;;  %v2072_v3 = vld [vmem:[%s4684_s3 + $0xa8] sm:$0xff] }
 0x10f   : > { %1826 = vmatprep.mubr.bf16.mxu0 %v3429_v19  ;;  %v2869_v21 = vpack.c.bf16 %v2072_v3, %v2071_v63 }
 0x110   : > { %1581 = vmatmul.mubr.bf16.gmra.mrb[56].mxu1 %v554_v38  ;;  %v509_v38 = vpack.c.bf16 %v341_v34, %v334_v8  ;;  %v453_v8 = vld [vmem:[%s3591_s25 + $0x6f8] sm:$0xff] }
 0x111   : > { %1590 = vmatprep.mubr.bf16.mxu1 %v562_v41  ;;  %2867 = vmatpush1.bf16.msra.mxu1 %v2866_v61  ;;  %v2081_v61 = vld [vmem:[%s4684_s3 + $0xf0] sm:$0xff] }
 0x112   : > { %2868 = vmatprep.subr.bf16.mxu1 %v3430_v28 }
 0x115   : > { %2870 = vmatpush1.bf16.msra.mxu1 %v2869_v21  ;;  %v404_v21 = vld [vmem:[%s3591_s25 + $0x570] sm:$0xff] }
 0x116   : > { %2656 = vmatmul.mubr.msk.bf16.vlgmr.msra.gmra.mrb[0].mxu0 %vm1166_vm0, %v460_v26  ;;  %2871 = vmatprep.subr.bf16.mxu1 %v3430_v28  ;;  %v2077_v26 = vld [vmem:[%s4684_s3 + $0xd0] sm:$0xff] }
 0x117   : > { %1836 = vmatprep.mubr.bf16.mxu0 %v3429_v19  ;;  %v2878_v30 = vpack.c.bf16 %v2078_v29, %v2077_v26  ;;  %v432_v26 = vld [vmem:[%s3591_s25 + $0x650] sm:$0xff]  ;;  %v439_v29 = vld [vmem:[%s3591_s25 + $0x688] sm:$0xff] }
 0x118   : > { %1591 = vmatmul.mubr.bf16.gmra.mrb[60].mxu1 %v561_v50 }
 0x119   : > { %2873 = vmatpush1.bf16.msra.mxu1 %v2872_v16 }
 0x11a   : > { %2874 = vmatprep.subr.bf16.mxu1 %v3430_v28 }
 0x11d   : > { %2876 = vmatpush1.bf16.msra.mxu1 %v2875_v22 }
 0x11e   : > { %2657 = vmatmul.mubr.msk.bf16.gmra.mrb[4].mxu0 %vm1166_vm0, %v467_v39  ;;  %2877 = vmatprep.subr.bf16.mxu1 %v3430_v28  ;;  %v355_v39 = vld [vmem:[%s3591_s25 + $0x3e8] sm:$0xff] }
 0x11f   : > { %1846 = vmatprep.mubr.bf16.mxu0 %v3429_v19  ;;  %v516_v10 = vpack.c.bf16 %v355_v39, %v348_v42 }
 0x121   : > { %2879 = vmatpush1.bf16.msra.mxu1 %v2878_v30  ;;  %v558_v30 = vpack.c.bf16 %v439_v29, %v432_v26 }
 0x122   : > { %2880 = vmatprep.subr.bf16.mxu1 %v3430_v28 }
 0x126   : > { %2658 = vmatmul.mubr.msk.bf16.gmra.mrb[8].mxu0 %vm1166_vm0, %v474_v47 }
 0x127   : > { %1856 = vmatprep.mubr.bf16.mxu0 %v3429_v19 }
 0x12e   : > { %2659 = vmatmul.mubr.msk.bf16.gmra.mrb[12].mxu0 %vm1166_vm0, %v481_v52  ;;  %v2080_v52 = vld [vmem:[%s4684_s3 + $0xe8] sm:$0xff] }
 0x12f   : > { %1866 = vmatprep.mubr.bf16.mxu0 %v3429_v19  ;;  %v2881_v14 = vpack.c.bf16 %v2080_v52, %v2079_v58 }
 0x131   : > { %v4247_v6 = vpop.f32.mrb[0].mxu1  ;;  %2882 = vmatpush1.bf16.msra.mxu1 %v2881_v14 }
 0x132   : > { %v4252_v25 = vpop.f32.mrb[1].mxu1  ;;  %2883 = vmatprep.subr.bf16.mxu1 %v3430_v28  ;;  %v411_v28 = vld [vmem:[%s3591_s25 + $0x5a8] sm:$0xff] }
 0x133   : > { %v4260_v31 = vpop.f32.mrb[2].mxu1  ;;  %v544_v15 = vpack.c.bf16 %v411_v28, %v404_v21 }
 0x134   : > { %v4262_v32 = vpop.f32.mrb[3].mxu1 }
 0x136   : > { %2660 = vmatmul.mubr.msk.bf16.gmra.mrb[16].mxu0 %vm1166_vm0, %v488_v62  ;;  %v2082_v62 = vld [vmem:[%s4684_s3 + $0xf8] sm:$0xff] }
 0x137   : > { %1876 = vmatprep.mubr.bf16.mxu0 %v3429_v19  ;;  %v2884_v63 = vpack.c.bf16 %v2082_v62, %v2081_v61  ;;  %v667_v61 = vshrl.u32 %v666_v2, 7 }
 0x139   : > { %v4266_v33 = vpop.f32.mrb[4].mxu1  ;;  %2885 = vmatpush1.bf16.msra.mxu1 %v2884_v63  ;;  %v668_v21 = vsub.s32 0, %v667_v61 }
 0x13a   : > { %v4272_v35 = vpop.f32.mrb[5].mxu1 }
 0x13b   : > { %v4274_v36 = vpop.f32.mrb[6].mxu1 }
 0x13c   : > { %v4276_v37 = vpop.f32.mrb[7].mxu1 }
 0x13e   : > { %2661 = vmatmul.mubr.msk.bf16.gmra.mrb[20].mxu0 %vm1166_vm0, %v495_v17  ;;  %v418_v17 = vld [vmem:[%s3591_s25 + $0x5e0] sm:$0xff] }
 0x13f   : > { %1886 = vmatprep.mubr.bf16.mxu0 %v3429_v19  ;;  %v551_v23 = vpack.c.bf16 %v425_v27, %v418_v17  ;;  %v672_v17 = vsub.s32 1, %v667_v61 }
 0x143   : > { %v4279_v41 = vpop.f32.mrb[8].mxu1 }
 0x144   : > { %v4284_v40 = vpop.f32.mrb[9].mxu1 }
 0x145   : > { %v4286_v45 = vpop.f32.mrb[10].mxu1 }
 0x146   : > { %2662 = vmatmul.mubr.msk.bf16.gmra.mrb[24].mxu0 %vm1166_vm0, %v502_v7  ;;  %v4288_v9 = vpop.f32.mrb[11].mxu1  ;;  %v446_v7 = vld [vmem:[%s3591_s25 + $0x6c0] sm:$0xff] }
 0x147   : > { %1896 = vmatprep.mubr.bf16.mxu0 %v3429_v19  ;;  %v565_v34 = vpack.c.bf16 %v453_v8, %v446_v7 }
 0x14b   : > { %v4291_v46 = vpop.f32.mrb[12].mxu1 }
 0x14c   : > { %v4296_v44 = vpop.f32.mrb[13].mxu1 }
 0x14d   : > { %v4298_v49 = vpop.f32.mrb[14].mxu1 }
 0x14e   : > { %2663 = vmatmul.mubr.msk.bf16.gmra.mrb[28].mxu0 %vm1166_vm0, %v509_v38  ;;  %v4300_v50 = vpop.f32.mrb[15].mxu1 }
 0x14f   : > { %1906 = vmatprep.mubr.bf16.mxu0 %v3429_v19 }
 0x153   : > { %v4303_v47 = vpop.f32.mrb[16].mxu1 }
 0x154   : > { %v4308_v55 = vpop.f32.mrb[17].mxu1 }
 0x155   : > { %v4310_v12 = vpop.f32.mrb[18].mxu1 }
 0x156   : > { %2664 = vmatmul.mubr.msk.bf16.gmra.mrb[32].mxu0 %vm1166_vm0, %v516_v10  ;;  %v4312_v56 = vpop.f32.mrb[19].mxu1 }
 0x157   : > { %1916 = vmatprep.mubr.bf16.mxu0 %v3429_v19 }
 0x15b   : > { %v4315_v57 = vpop.f32.mrb[20].mxu1 }
 0x15c   : > { %v4326_v59 = vpop.f32.mrb[21].mxu1 }
 0x15d   : > { %v4328_v18 = vpop.f32.mrb[22].mxu1 }
 0x15e   : > { %2665 = vmatmul.mubr.msk.bf16.gmra.mrb[36].mxu0 %vm1166_vm0, %v523_v53  ;;  %v4330_v54 = vpop.f32.mrb[23].mxu1 }
 0x15f   : > { %1926 = vmatprep.mubr.bf16.mxu0 %v3429_v19 }
 0x163   : > { %v4340_v3 = vpop.f32.mrb[24].mxu1 }
 0x164   : > { %v4345_v13 = vpop.f32.mrb[25].mxu1 }
 0x165   : > { %v4347_v24 = vpop.f32.mrb[26].mxu1 }
 0x166   : > { %2666 = vmatmul.mubr.msk.bf16.gmra.mrb[40].mxu0 %vm1166_vm0, %v530_v51  ;;  %v4349_v4 = vpop.f32.mrb[27].mxu1 }
 0x167   : > { %1936 = vmatprep.mubr.bf16.mxu0 %v3429_v19 }
 0x16b   : > { %v4352_v16 = vpop.f32.mrb[28].mxu1 }
 0x16c   : > { %v4357_v20 = vpop.f32.mrb[29].mxu1 }
 0x16d   : > { %v4359_v22 = vpop.f32.mrb[30].mxu1 }
 0x16e   : > { %2667 = vmatmul.mubr.msk.bf16.gmra.mrb[44].mxu0 %vm1166_vm0, %v537_v60  ;;  %v4361_v5 = vpop.f32.mrb[31].mxu1 }
 0x16f   : > { %1946 = vmatprep.mubr.bf16.mxu0 %v3429_v19 }
 0x176   : > { %2668 = vmatmul.mubr.msk.bf16.gmra.mrb[48].mxu0 %vm1166_vm0, %v544_v15  ;;  %v664_v15 = vld [vmem:[%s4683_s2] sm:$0x3] }
 0x177   : > { %1956 = vmatprep.mubr.bf16.mxu0 %v3429_v19  ;;  %v4417_v26 = vrot.slane %v664_v15, %v672_v17 }
 0x17e   : > { %2669 = vmatmul.mubr.msk.bf16.gmra.mrb[52].mxu0 %vm1166_vm0, %v551_v23  ;;  %v4415_v23 = vrot.slane %v664_v15, %v668_v21 }
 0x17f   : > { %1966 = vmatprep.mubr.bf16.mxu0 %v3429_v19 }
 0x180   : > { %v1250_v7 = vadd.f32 %v4247_v6, %v4415_v23  ;;  %v1254_v21 = vadd.f32 %v4260_v31, %v4415_v23  ;;  %v1260_v31 = vadd.f32 %v4266_v33, %v4415_v23 }
 0x186   : > { %2670 = vmatmul.mubr.msk.bf16.gmra.mrb[56].mxu0 %vm1166_vm0, %v558_v30 }
 0x187   : > { %1976 = vmatprep.mubr.bf16.mxu0 %v3429_v19 }
 0x18e   : > { %2671 = vmatmul.mubr.msk.bf16.gmra.mrb[60].mxu0 %vm1166_vm0, %v565_v34  ;;  %v1252_v34 = vadd.f32 %v4252_v25, %v4417_v26 }
 0x1b3   : > { %v4372_v38 = vpop.f32.mrb[32].mxu1 }
 0x1b4   : > { %v4374_v42 = vpop.f32.mrb[33].mxu1 }
 0x1b5   : > { %v4376_v39 = vpop.f32.mrb[34].mxu1 }
 0x1b6   : > { %v4378_v10 = vpop.f32.mrb[35].mxu1 }
 0x1bb   : > { %v4380_v0 = vpop.f32.mrb[36].mxu1 }
 0x1bc   : > { %v4382_v43 = vpop.f32.mrb[37].mxu1 }
 0x1bd   : > { %v4384_v53 = vpop.f32.mrb[38].mxu1 }
 0x1be   : > { %v4386_v19 = vpop.f32.mrb[39].mxu1 }
 0x1c3   : > { %v4388_v48 = vpop.f32.mrb[40].mxu1 }
 0x1c4   : > { %v4390_v11 = vpop.f32.mrb[41].mxu1 }
 0x1c5   : > { %v4392_v51 = vpop.f32.mrb[42].mxu1 }
 0x1c6   : > { %v4394_v58 = vpop.f32.mrb[43].mxu1 }
 0x1cb   : > { %v4396_v52 = vpop.f32.mrb[44].mxu1 }
 0x1cc   : > { %v4398_v1 = vpop.f32.mrb[45].mxu1 }
 0x1cd   : > { %v4400_v14 = vpop.f32.mrb[46].mxu1 }
 0x1ce   : > { %v4402_v60 = vpop.f32.mrb[47].mxu1 }
 0x1cf   : > { %4689 = vst [vmem:[#allocation5_spill] sm:$0xff] %v4402_v60 }
 0x1d3   : > { %v4404_v62 = vpop.f32.mrb[48].mxu1 }
 0x1d4   : > { %4690 = vst [vmem:[#allocation6_spill] sm:$0xff] %v4404_v62  ;;  %v4406_v63 = vpop.f32.mrb[49].mxu1 }
 0x1d5   : > { %4691 = vst [vmem:[#allocation7_spill] sm:$0xff] %v4406_v63  ;;  %v4408_v28 = vpop.f32.mrb[50].mxu1 }
 0x1d6   : > { %4692 = vst [vmem:[#allocation8_spill] sm:$0xff] %v4408_v28  ;;  %v4413_v27 = vpop.f32.mrb[51].mxu1 }
 0x1d7   : > { %4693 = vst [vmem:[#allocation9_spill] sm:$0xff] %v4413_v27 }
 0x1db   : > { %v4419_v29 = vpop.f32.mrb[52].mxu1 }
 0x1dc   : > { %4694 = vst [vmem:[#allocation10_spill] sm:$0xff] %v4419_v29  ;;  %v4421_v30 = vpop.f32.mrb[53].mxu1  ;;  %v1256_v29 = vadd.f32 %v4262_v32, %v4417_v26  ;;  %v1262_v32 = vadd.f32 %v4272_v35, %v4417_v26 }
 0x1dd   : > { %4695 = vst [vmem:[#allocation11_spill] sm:$0xff] %v4421_v30  ;;  %v4425_v8 = vpop.f32.mrb[54].mxu1 }
 0x1de   : > { %4696 = vst [vmem:[#allocation12_spill] sm:$0xff] %v4425_v8  ;;  %v4429_v61 = vpop.f32.mrb[55].mxu1 }
 0x1df   : > { %4697 = vst [vmem:[#allocation13_spill] sm:$0xff] %v4429_v61 }
 0x1e3   : > { %v4435_v60 = vpop.f32.mrb[56].mxu1 }
 0x1e4   : > { %v4437_v61 = vpop.f32.mrb[57].mxu1 }
 0x1e9   : > { %v1828_v2 = vpop.f32.mrb[0].mxu0 }
 0x1ea   : > { %v2919_v15 = vadd.f32 %v1828_v2, %v1250_v7  ;;  %v1830_v17 = vpop.f32.mrb[1].mxu0  ;;  %v4441_v7 = vpop.f32.mrb[58].mxu1  ;;  %v1266_v2 = vadd.f32 %v4276_v37, %v4417_v26  ;;  %v1272_v37 = vadd.f32 %v4284_v40, %v4417_v26 }
 0x1eb   : > { %v2921_v30 = vadd.f32 %v1830_v17, %v1252_v34  ;;  %v1832_v27 = vpop.f32.mrb[2].mxu0  ;;  %4698 = vst [vmem:[#allocation14_spill] sm:$0xff] %v4441_v7 }
 0x1ec   : > { %v2923_v28 = vadd.f32 %v1832_v27, %v1254_v21  ;;  %v1834_v6 = vpop.f32.mrb[3].mxu0  ;;  %v1987_v62 = vmax.f32 %v2919_v15, 0.0 }
 0x1ed   : > { %v1988_v63 = vmax.f32 %v2921_v30, 0.0  ;;  %v2925_v8 = vadd.f32 %v1834_v6, %v1256_v29  ;;  %v4445_v30 = vpop.f32.mrb[59].mxu1  ;;  %v1264_v29 = vadd.f32 %v4274_v36, %v4415_v23  ;;  %v1270_v36 = vadd.f32 %v4279_v41, %v4415_v23 }
 0x1ee   : > { %4699 = vst [vmem:[#allocation15_spill] sm:$0xff] %v4445_v30 }
 0x1ef   : > { %v1990_v25 = vmax.f32 %v2925_v8, 0.0  ;;  %2154 = vmatprep.mubr.f32.mxu1 %v1988_v63  ;;  %v1989_v8 = vmax.f32 %v2923_v28, 0.0 }
 0x1f0   : > { %2155 = vmatmul.mubr.f32.vlgmr.msra.gmra.mrb[64].mxu1 %v1987_v62 }
 0x1f1   : > { %v1838_v27 = vpop.f32.mrb[4].mxu0  ;;  %2159 = vmatprep.mubr.f32.mxu1 %v1990_v25  ;;  %v4451_v25 = vpop.f32.mrb[60].mxu1 }
 0x1f2   : > { %v2927_v63 = vadd.f32 %v1838_v27, %v1260_v31  ;;  %v1840_v34 = vpop.f32.mrb[5].mxu0  ;;  %v4453_v7 = vpop.f32.mrb[61].mxu1  ;;  %v1274_v27 = vadd.f32 %v4286_v45, %v4415_v23  ;;  %v1282_v45 = vadd.f32 %v4296_v44, %v4417_v26 }
 0x1f3   : > { %v2929_v33 = vadd.f32 %v1840_v34, %v1262_v32  ;;  %v1842_v62 = vpop.f32.mrb[6].mxu0  ;;  %v4457_v28 = vpop.f32.mrb[62].mxu1  ;;  %v1276_v34 = vadd.f32 %v4288_v9, %v4417_v26  ;;  %v1284_v9 = vadd.f32 %v4298_v49, %v4415_v23  ;;  %v1292_v49 = vadd.f32 %v4308_v55, %v4417_v26 }
 0x1f4   : > { %v2931_v21 = vadd.f32 %v1842_v62, %v1264_v29  ;;  %v1844_v15 = vpop.f32.mrb[7].mxu0  ;;  %2160 = vmatmul.mubr.f32.gmra.mrb[66].mxu1 %v1989_v8  ;;  %v1991_v6 = vmax.f32 %v2927_v63, 0.0  ;;  %v4461_v32 = vpop.f32.mrb[63].mxu1 }
 0x1f5   : > { %v1992_v17 = vmax.f32 %v2929_v33, 0.0  ;;  %v2933_v35 = vadd.f32 %v1844_v15, %v1266_v2 }
 0x1f6   : > { %v1993_v29 = vmax.f32 %v2931_v21, 0.0 }
 0x1f7   : > { %v1994_v30 = vmax.f32 %v2933_v35, 0.0  ;;  %2164 = vmatprep.mubr.f32.mxu1 %v1992_v17  ;;  %v1280_v35 = vadd.f32 %v4291_v46, %v4415_v23 }
 0x1f8   : > { %2165 = vmatmul.mubr.f32.gmra.mrb[68].mxu1 %v1991_v6 }
 0x1f9   : > { %v1848_v31 = vpop.f32.mrb[8].mxu0  ;;  %2169 = vmatprep.mubr.f32.mxu1 %v1994_v30 }
 0x1fa   : > { %v2935_v8 = vadd.f32 %v1848_v31, %v1270_v36  ;;  %v1850_v63 = vpop.f32.mrb[9].mxu0  ;;  %v1286_v31 = vadd.f32 %v4300_v50, %v4417_v26  ;;  %v1294_v50 = vadd.f32 %v4310_v12, %v4415_v23  ;;  %v1302_v12 = vadd.f32 %v4326_v59, %v4417_v26 }
 0x1fb   : > { %v2937_v41 = vadd.f32 %v1850_v63, %v1272_v37  ;;  %v1852_v2 = vpop.f32.mrb[10].mxu0 }
 0x1fc   : > { %v2939_v33 = vadd.f32 %v1852_v2, %v1274_v27  ;;  %v1854_v62 = vpop.f32.mrb[11].mxu0  ;;  %2170 = vmatmul.mubr.f32.gmra.mrb[70].mxu1 %v1993_v29  ;;  %v1995_v17 = vmax.f32 %v2935_v8, 0.0  ;;  %v1290_v2 = vadd.f32 %v4303_v47, %v4415_v23 }
 0x1fd   : > { %v1996_v15 = vmax.f32 %v2937_v41, 0.0  ;;  %v2941_v40 = vadd.f32 %v1854_v62, %v1276_v34 }
 0x1fe   : > { %v1997_v6 = vmax.f32 %v2939_v33, 0.0 }
 0x1ff   : > { %v1998_v30 = vmax.f32 %v2941_v40, 0.0  ;;  %2174 = vmatprep.mubr.f32.mxu1 %v1996_v15 }
 0x200   : > { %2175 = vmatmul.mubr.f32.gmra.mrb[72].mxu1 %v1995_v17  ;;  %v1296_v17 = vadd.f32 %v4312_v56, %v4417_v26  ;;  %v1304_v56 = vadd.f32 %v4328_v18, %v4415_v23  ;;  %v1312_v18 = vadd.f32 %v4345_v13, %v4417_v26 }
 0x201   : > { %v1858_v21 = vpop.f32.mrb[12].mxu0  ;;  %2179 = vmatprep.mubr.f32.mxu1 %v1998_v30 }
 0x202   : > { %v2943_v36 = vadd.f32 %v1858_v21, %v1280_v35  ;;  %v1860_v37 = vpop.f32.mrb[13].mxu0 }
 0x203   : > { %v2945_v27 = vadd.f32 %v1860_v37, %v1282_v45  ;;  %v1862_v29 = vpop.f32.mrb[14].mxu0 }
 0x204   : > { %v2947_v8 = vadd.f32 %v1862_v29, %v1284_v9  ;;  %v1864_v63 = vpop.f32.mrb[15].mxu0  ;;  %2180 = vmatmul.mubr.f32.gmra.mrb[74].mxu1 %v1997_v6  ;;  %v1999_v41 = vmax.f32 %v2943_v36, 0.0  ;;  %v1300_v36 = vadd.f32 %v4315_v57, %v4415_v23 }
 0x205   : > { %v2000_v46 = vmax.f32 %v2945_v27, 0.0  ;;  %v2949_v34 = vadd.f32 %v1864_v63, %v1286_v31 }
 0x206   : > { %v2001_v62 = vmax.f32 %v2947_v8, 0.0  ;;  %v1306_v8 = vadd.f32 %v4330_v54, %v4417_v26  ;;  %v1314_v54 = vadd.f32 %v4347_v24, %v4415_v23  ;;  %v1322_v24 = vadd.f32 %v4357_v20, %v4417_v26 }
 0x207   : > { %v2002_v44 = vmax.f32 %v2949_v34, 0.0  ;;  %2184 = vmatprep.mubr.f32.mxu1 %v2000_v46 }
 0x208   : > { %2185 = vmatmul.mubr.f32.gmra.mrb[76].mxu1 %v1999_v41 }
 0x209   : > { %v1868_v33 = vpop.f32.mrb[16].mxu0  ;;  %2189 = vmatprep.mubr.f32.mxu1 %v2002_v44 }
 0x20a   : > { %v2951_v15 = vadd.f32 %v1868_v33, %v1290_v2  ;;  %v1870_v40 = vpop.f32.mrb[17].mxu0 }
 0x20b   : > { %v2953_v30 = vadd.f32 %v1870_v40, %v1292_v49  ;;  %v1872_v35 = vpop.f32.mrb[18].mxu0  ;;  %v1310_v49 = vadd.f32 %v4340_v3, %v4415_v23  ;;  %v1316_v40 = vadd.f32 %v4349_v4, %v4417_v26  ;;  %v1324_v4 = vadd.f32 %v4359_v22, %v4415_v23 }
 0x20c   : > { %v2955_v45 = vadd.f32 %v1872_v35, %v1294_v50  ;;  %v1874_v21 = vpop.f32.mrb[19].mxu0  ;;  %2190 = vmatmul.mubr.f32.gmra.mrb[78].mxu1 %v2001_v62  ;;  %v2003_v6 = vmax.f32 %v2951_v15, 0.0  ;;  %v2984_v22 = vadd.f32 %v4374_v42, %v4417_v26 }
 0x20d   : > { %v2004_v47 = vmax.f32 %v2953_v30, 0.0  ;;  %v2957_v9 = vadd.f32 %v1874_v21, %v1296_v17 }
 0x20e   : > { %v2005_v31 = vmax.f32 %v2955_v45, 0.0 }
 0x20f   : > { %v2006_v55 = vmax.f32 %v2957_v9, 0.0  ;;  %2194 = vmatprep.mubr.f32.mxu1 %v2004_v47  ;;  %v1320_v9 = vadd.f32 %v4352_v16, %v4415_v23 }
 0x210   : > { %2195 = vmatmul.mubr.f32.gmra.mrb[80].mxu1 %v2003_v6 }
 0x211   : > { %v1878_v37 = vpop.f32.mrb[20].mxu0  ;;  %2199 = vmatprep.mubr.f32.mxu1 %v2006_v55 }
 0x212   : > { %v2959_v27 = vadd.f32 %v1878_v37, %v1300_v36  ;;  %v1880_v29 = vpop.f32.mrb[21].mxu0  ;;  %v1326_v37 = vadd.f32 %v4361_v5, %v4417_v26  ;;  %v2986_v5 = vadd.f32 %v4376_v39, %v4415_v23  ;;  %v2992_v39 = vadd.f32 %v4382_v43, %v4417_v26 }
 0x213   : > { %v2961_v63 = vadd.f32 %v1880_v29, %v1302_v12  ;;  %v1882_v46 = vpop.f32.mrb[22].mxu0 }
 0x214   : > { %v2963_v34 = vadd.f32 %v1882_v46, %v1304_v56  ;;  %v1884_v41 = vpop.f32.mrb[23].mxu0  ;;  %2200 = vmatmul.mubr.f32.gmra.mrb[82].mxu1 %v2005_v31  ;;  %v2007_v2 = vmax.f32 %v2959_v27, 0.0  ;;  %v2982_v46 = vadd.f32 %v4372_v38, %v4415_v23 }
 0x215   : > { %v2008_v57 = vmax.f32 %v2961_v63, 0.0  ;;  %v2965_v44 = vadd.f32 %v1884_v41, %v1306_v8 }
 0x216   : > { %v2009_v50 = vmax.f32 %v2963_v34, 0.0 }
 0x217   : > { %v2010_v59 = vmax.f32 %v2965_v44, 0.0  ;;  %2204 = vmatprep.mubr.f32.mxu1 %v2008_v57 }
 0x218   : > { %2205 = vmatmul.mubr.f32.gmra.mrb[84].mxu1 %v2007_v2  ;;  %v2988_v2 = vadd.f32 %v4378_v10, %v4417_v26  ;;  %v2994_v10 = vadd.f32 %v4384_v53, %v4415_v23  ;;  %v3000_v53 = vadd.f32 %v4390_v11, %v4417_v26 }
 0x219   : > { %v1888_v33 = vpop.f32.mrb[24].mxu0  ;;  %2209 = vmatprep.mubr.f32.mxu1 %v2010_v59 }
 0x21a   : > { %v2967_v62 = vadd.f32 %v1888_v33, %v1310_v49  ;;  %v1890_v15 = vpop.f32.mrb[25].mxu0 }
 0x21b   : > { %v2969_v17 = vadd.f32 %v1890_v15, %v1312_v18  ;;  %v1892_v30 = vpop.f32.mrb[26].mxu0 }
 0x21c   : > { %v2971_v35 = vadd.f32 %v1892_v30, %v1314_v54  ;;  %v1894_v45 = vpop.f32.mrb[27].mxu0  ;;  %2210 = vmatmul.mubr.f32.gmra.mrb[86].mxu1 %v2009_v50  ;;  %v2011_v47 = vmax.f32 %v2967_v62, 0.0  ;;  %v2990_v62 = vadd.f32 %v4380_v0, %v4415_v23 }
 0x21d   : > { %v2012_v3 = vmax.f32 %v2969_v17, 0.0  ;;  %v2973_v21 = vadd.f32 %v1894_v45, %v1316_v40 }
 0x21e   : > { %v2013_v55 = vmax.f32 %v2971_v35, 0.0  ;;  %v2996_v35 = vadd.f32 %v4386_v19, %v4417_v26  ;;  %v3002_v19 = vadd.f32 %v4392_v51, %v4415_v23  ;;  %v3008_v51 = vadd.f32 %v4398_v1, %v4417_v26 }
 0x21f   : > { %v2014_v13 = vmax.f32 %v2973_v21, 0.0  ;;  %2214 = vmatprep.mubr.f32.mxu1 %v2012_v3 }
 0x220   : > { %2215 = vmatmul.mubr.f32.gmra.mrb[88].mxu1 %v2011_v47 }
 0x221   : > { %v1898_v6 = vpop.f32.mrb[28].mxu0  ;;  %2219 = vmatprep.mubr.f32.mxu1 %v2014_v13 }
 0x222   : > { %v2975_v36 = vadd.f32 %v1898_v6, %v1320_v9  ;;  %v1900_v12 = vpop.f32.mrb[29].mxu0 }
 0x223   : > { %v2977_v56 = vadd.f32 %v1900_v12, %v1322_v24  ;;  %v1902_v31 = vpop.f32.mrb[30].mxu0  ;;  %v2998_v24 = vadd.f32 %v4388_v48, %v4415_v23  ;;  %v3004_v12 = vadd.f32 %v4394_v58, %v4417_v26  ;;  %v3010_v58 = vadd.f32 %v4400_v14, %v4415_v23  ;;  %v4702_v14 = vld [vmem:[#allocation7_spill] sm:$0xff] }
 0x224   : > { %v2979_v27 = vadd.f32 %v1902_v31, %v1324_v4  ;;  %v1904_v29 = vpop.f32.mrb[31].mxu0  ;;  %2220 = vmatmul.mubr.f32.gmra.mrb[90].mxu1 %v2013_v55  ;;  %v2015_v63 = vmax.f32 %v2975_v36, 0.0 }
 0x225   : > { %v2016_v16 = vmax.f32 %v2977_v56, 0.0  ;;  %v2981_v8 = vadd.f32 %v1904_v29, %v1326_v37 }
 0x226   : > { %v2017_v41 = vmax.f32 %v2979_v27, 0.0 }
 0x227   : > { %v2018_v20 = vmax.f32 %v2981_v8, 0.0  ;;  %2224 = vmatprep.mubr.f32.mxu1 %v2016_v16  ;;  %v3006_v8 = vadd.f32 %v4396_v52, %v4415_v23 }
 0x228   : > { %2225 = vmatmul.mubr.f32.gmra.mrb[92].mxu1 %v2015_v63 }
 0x229   : > { %v1908_v34 = vpop.f32.mrb[32].mxu0  ;;  %2229 = vmatprep.mubr.f32.mxu1 %v2018_v20 }
 0x22a   : > { %v2983_v57 = vadd.f32 %v2982_v46, %v1908_v34  ;;  %v1910_v44 = vpop.f32.mrb[33].mxu0  ;;  %v4700_v34 = vld [vmem:[#allocation5_spill] sm:$0xff] }
 0x22b   : > { %v2985_v59 = vadd.f32 %v2984_v22, %v1910_v44  ;;  %v1912_v49 = vpop.f32.mrb[34].mxu0 }
 0x22c   : > { %v2987_v18 = vadd.f32 %v2986_v5, %v1912_v49  ;;  %v1914_v33 = vpop.f32.mrb[35].mxu0  ;;  %2230 = vmatmul.mubr.f32.gmra.mrb[94].mxu1 %v2017_v41  ;;  %v2019_v50 = vmax.f32 %v2983_v57, 0.0  ;;  %v3012_v5 = vadd.f32 %v4700_v34, %v4417_v26 }
 0x22d   : > { %v2020_v38 = vmax.f32 %v2985_v59, 0.0  ;;  %v2989_v54 = vadd.f32 %v2988_v2, %v1914_v33 }
 0x22e   : > { %v2021_v40 = vmax.f32 %v2987_v18, 0.0  ;;  %v4701_v18 = vld [vmem:[#allocation6_spill] sm:$0xff] }
 0x22f   : > { %v2022_v42 = vmax.f32 %v2989_v54, 0.0  ;;  %2234 = vmatprep.mubr.f32.mxu1 %v2020_v38  ;;  %v3014_v33 = vadd.f32 %v4701_v18, %v4415_v23  ;;  %v3016_v38 = vadd.f32 %v4702_v14, %v4417_v26  ;;  %v3038_v18 = vadd.f32 %v4451_v25, %v4415_v23 }
 0x230   : > { %2235 = vmatmul.mubr.f32.gmra.mrb[96].mxu1 %v2019_v50  ;;  %v4703_v50 = vld [vmem:[#allocation8_spill] sm:$0xff] }
 0x231   : > { %v1918_v15 = vpop.f32.mrb[36].mxu0  ;;  %2239 = vmatprep.mubr.f32.mxu1 %v2022_v42  ;;  %v3018_v42 = vadd.f32 %v4703_v50, %v4415_v23 }
 0x232   : > { %v2991_v17 = vadd.f32 %v2990_v62, %v1918_v15  ;;  %v1920_v30 = vpop.f32.mrb[37].mxu0 }
 0x233   : > { %v2993_v45 = vadd.f32 %v2992_v39, %v1920_v30  ;;  %v1922_v3 = vpop.f32.mrb[38].mxu0 }
 0x234   : > { %v2995_v21 = vadd.f32 %v2994_v10, %v1922_v3  ;;  %v1924_v47 = vpop.f32.mrb[39].mxu0  ;;  %2240 = vmatmul.mubr.f32.gmra.mrb[98].mxu1 %v2021_v40  ;;  %v2023_v9 = vmax.f32 %v2991_v17, 0.0  ;;  %v4704_v10 = vld [vmem:[#allocation9_spill] sm:$0xff] }
 0x235   : > { %v2024_v0 = vmax.f32 %v2993_v45, 0.0  ;;  %v2997_v13 = vadd.f32 %v2996_v35, %v1924_v47  ;;  %v3020_v40 = vadd.f32 %v4704_v10, %v4417_v26 }
 0x236   : > { %v2025_v4 = vmax.f32 %v2995_v21, 0.0 }
 0x237   : > { %v2026_v43 = vmax.f32 %v2997_v13, 0.0  ;;  %2244 = vmatprep.mubr.f32.mxu1 %v2024_v0  ;;  %v4705_v13 = vld [vmem:[#allocation10_spill] sm:$0xff] }
 0x238   : > { %2245 = vmatmul.mubr.f32.gmra.mrb[100].mxu1 %v2023_v9  ;;  %v3022_v9 = vadd.f32 %v4705_v13, %v4415_v23 }
 0x239   : > { %v1928_v6 = vpop.f32.mrb[40].mxu0  ;;  %2249 = vmatprep.mubr.f32.mxu1 %v2026_v43  ;;  %v4706_v43 = vld [vmem:[#allocation11_spill] sm:$0xff] }
 0x23a   : > { %v2999_v55 = vadd.f32 %v2998_v24, %v1928_v6  ;;  %v1930_v36 = vpop.f32.mrb[41].mxu0  ;;  %v3024_v24 = vadd.f32 %v4706_v43, %v4417_v26  ;;  %v4707_v6 = vld [vmem:[#allocation12_spill] sm:$0xff] }
 0x23b   : > { %v3001_v37 = vadd.f32 %v3000_v53, %v1930_v36  ;;  %v1932_v56 = vpop.f32.mrb[42].mxu0 }
 0x23c   : > { %v3003_v31 = vadd.f32 %v3002_v19, %v1932_v56  ;;  %v1934_v27 = vpop.f32.mrb[43].mxu0  ;;  %2250 = vmatmul.mubr.f32.gmra.mrb[102].mxu1 %v2025_v4  ;;  %v2027_v16 = vmax.f32 %v2999_v55, 0.0  ;;  %v3026_v19 = vadd.f32 %v4707_v6, %v4415_v23 }
 0x23d   : > { %v2028_v48 = vmax.f32 %v3001_v37, 0.0  ;;  %v3005_v29 = vadd.f32 %v3004_v12, %v1934_v27  ;;  %v4708_v12 = vld [vmem:[#allocation13_spill] sm:$0xff] }
 0x23e   : > { %v2029_v20 = vmax.f32 %v3003_v31, 0.0  ;;  %v3028_v37 = vadd.f32 %v4708_v12, %v4417_v26 }
 0x23f   : > { %v2030_v11 = vmax.f32 %v3005_v29, 0.0  ;;  %2254 = vmatprep.mubr.f32.mxu1 %v2028_v48 }
 0x240   : > { %2255 = vmatmul.mubr.f32.gmra.mrb[104].mxu1 %v2027_v16 }
 0x241   : > { %v1938_v63 = vpop.f32.mrb[44].mxu0  ;;  %2259 = vmatprep.mubr.f32.mxu1 %v2030_v11 }
 0x242   : > { %v3007_v46 = vadd.f32 %v3006_v8, %v1938_v63  ;;  %v1940_v22 = vpop.f32.mrb[45].mxu0  ;;  %v3032_v63 = vadd.f32 %v4437_v61, %v4417_v26 }
 0x243   : > { %v3009_v41 = vadd.f32 %v3008_v51, %v1940_v22  ;;  %v1942_v57 = vpop.f32.mrb[46].mxu0  ;;  %v3030_v51 = vadd.f32 %v4435_v60, %v4415_v23 }
 0x244   : > { %v3011_v44 = vadd.f32 %v3010_v58, %v1942_v57  ;;  %v1944_v2 = vpop.f32.mrb[47].mxu0  ;;  %2260 = vmatmul.mubr.f32.gmra.mrb[106].mxu1 %v2029_v20  ;;  %v2031_v49 = vmax.f32 %v3007_v46, 0.0  ;;  %v4709_v20 = vld [vmem:[#allocation14_spill] sm:$0xff] }
 0x245   : > { %v2032_v52 = vmax.f32 %v3009_v41, 0.0  ;;  %v3013_v59 = vadd.f32 %v3012_v5, %v1944_v2  ;;  %v3034_v46 = vadd.f32 %v4709_v20, %v4415_v23  ;;  %v4710_v41 = vld [vmem:[#allocation15_spill] sm:$0xff] }
 0x246   : > { %v2033_v62 = vmax.f32 %v3011_v44, 0.0  ;;  %v3036_v57 = vadd.f32 %v4710_v41, %v4417_v26 }
 0x247   : > { %v2034_v1 = vmax.f32 %v3013_v59, 0.0  ;;  %2264 = vmatprep.mubr.f32.mxu1 %v2032_v52 }
 0x248   : > { %2265 = vmatmul.mubr.f32.gmra.mrb[108].mxu1 %v2031_v49 }
 0x249   : > { %v1948_v54 = vpop.f32.mrb[48].mxu0  ;;  %2269 = vmatprep.mubr.f32.mxu1 %v2034_v1 }
 0x24a   : > { %v3015_v39 = vadd.f32 %v3014_v33, %v1948_v54  ;;  %v1950_v15 = vpop.f32.mrb[49].mxu0  ;;  %v3040_v33 = vadd.f32 %v4453_v7, %v4417_v26 }
 0x24b   : > { %v3017_v17 = vadd.f32 %v3016_v38, %v1950_v15  ;;  %v1952_v30 = vpop.f32.mrb[50].mxu0  ;;  %v3042_v38 = vadd.f32 %v4457_v28, %v4415_v23 }
 0x24c   : > { %v3019_v35 = vadd.f32 %v3018_v42, %v1952_v30  ;;  %v1954_v45 = vpop.f32.mrb[51].mxu0  ;;  %2270 = vmatmul.mubr.f32.gmra.mrb[110].mxu1 %v2033_v62  ;;  %v2035_v47 = vmax.f32 %v3015_v39, 0.0  ;;  %v3044_v62 = vadd.f32 %v4461_v32, %v4417_v26  ;;  %v4575_v26 = vld [vmem:[%s4685_s4] ss:$0 sm:$0xff] }
 0x24d   : > { %v2036_v3 = vmax.f32 %v3017_v17, 0.0  ;;  %v3021_v21 = vadd.f32 %v3020_v40, %v1954_v45 }
 0x24e   : > { %v2037_v4 = vmax.f32 %v3019_v35, 0.0 }
 0x24f   : > { %v2038_v0 = vmax.f32 %v3021_v21, 0.0  ;;  %2274 = vmatprep.mubr.f32.mxu1 %v2036_v3 }
 0x250   : > { %2275 = vmatmul.mubr.f32.gmra.mrb[112].mxu1 %v2035_v47 }
 0x251   : > { %v1958_v53 = vpop.f32.mrb[52].mxu0  ;;  %2279 = vmatprep.mubr.f32.mxu1 %v2038_v0 }
 0x252   : > { %v3023_v55 = vadd.f32 %v3022_v9, %v1958_v53  ;;  %v1960_v36 = vpop.f32.mrb[53].mxu0 }
 0x253   : > { %v3025_v56 = vadd.f32 %v3024_v24, %v1960_v36  ;;  %v1962_v31 = vpop.f32.mrb[54].mxu0 }
 0x254   : > { %v3027_v27 = vadd.f32 %v3026_v19, %v1962_v31  ;;  %v1964_v48 = vpop.f32.mrb[55].mxu0  ;;  %2280 = vmatmul.mubr.f32.gmra.mrb[114].mxu1 %v2037_v4  ;;  %v2039_v11 = vmax.f32 %v3023_v55, 0.0 }
 0x255   : > { %v2040_v29 = vmax.f32 %v3025_v56, 0.0  ;;  %v3029_v16 = vadd.f32 %v3028_v37, %v1964_v48 }
 0x256   : > { %v2041_v22 = vmax.f32 %v3027_v27, 0.0 }
 0x257   : > { %v2042_v8 = vmax.f32 %v3029_v16, 0.0  ;;  %2284 = vmatprep.mubr.f32.mxu1 %v2040_v29 }
 0x258   : > { %2285 = vmatmul.mubr.f32.gmra.mrb[116].mxu1 %v2039_v11 }
 0x259   : > { %v1968_v58 = vpop.f32.mrb[56].mxu0  ;;  %2289 = vmatprep.mubr.f32.mxu1 %v2042_v8 }
 0x25a   : > { %v3031_v34 = vadd.f32 %v3030_v51, %v1968_v58  ;;  %v1970_v5 = vpop.f32.mrb[57].mxu0 }
 0x25b   : > { %v3033_v44 = vadd.f32 %v3032_v63, %v1970_v5  ;;  %v1972_v2 = vpop.f32.mrb[58].mxu0 }
 0x25c   : > { %v3035_v52 = vadd.f32 %v3034_v46, %v1972_v2  ;;  %v1974_v59 = vpop.f32.mrb[59].mxu0  ;;  %2290 = vmatmul.mubr.f32.gmra.mrb[118].mxu1 %v2041_v22  ;;  %v2043_v1 = vmax.f32 %v3031_v34, 0.0 }
 0x25d   : > { %v2044_v60 = vmax.f32 %v3033_v44, 0.0  ;;  %v3037_v49 = vadd.f32 %v3036_v57, %v1974_v59 }
 0x25e   : > { %v2045_v54 = vmax.f32 %v3035_v52, 0.0 }
 0x25f   : > { %v2046_v61 = vmax.f32 %v3037_v49, 0.0  ;;  %2294 = vmatprep.mubr.f32.mxu1 %v2044_v60 }
 0x260   : > { %2295 = vmatmul.mubr.f32.gmra.mrb[120].mxu1 %v2043_v1 }
 0x261   : > { %v1978_v14 = vpop.f32.mrb[60].mxu0  ;;  %2299 = vmatprep.mubr.f32.mxu1 %v2046_v61 }
 0x262   : > { %v3039_v50 = vadd.f32 %v3038_v18, %v1978_v14  ;;  %v1980_v42 = vpop.f32.mrb[61].mxu0 }
 0x263   : > { %v3041_v39 = vadd.f32 %v3040_v33, %v1980_v42  ;;  %v1982_v15 = vpop.f32.mrb[62].mxu0 }
 0x264   : > { %v3043_v10 = vadd.f32 %v3042_v38, %v1982_v15  ;;  %v1984_v25 = vpop.f32.mrb[63].mxu0  ;;  %2300 = vmatmul.mubr.f32.gmra.mrb[122].mxu1 %v2045_v54  ;;  %v2047_v17 = vmax.f32 %v3039_v50, 0.0 }
 0x265   : > { %v2048_v40 = vmax.f32 %v3041_v39, 0.0  ;;  %v3045_v7 = vadd.f32 %v3044_v62, %v1984_v25 }
 0x266   : > { %v2049_v23 = vmax.f32 %v3043_v10, 0.0 }
 0x267   : > { %v2050_v30 = vmax.f32 %v3045_v7, 0.0  ;;  %2304 = vmatprep.mubr.f32.mxu1 %v2048_v40 }
 0x268   : > { %2305 = vmatmul.mubr.f32.gmra.mrb[124].mxu1 %v2047_v17 }
 0x269   : > { %2309 = vmatprep.mubr.f32.mxu1 %v2050_v30 }
 0x26c   : > { %2310 = vmatmul.mubr.f32.gmra.mrb[126].mxu1 %v2049_v23 }
 0x2c3   : > { %v2156_v28 = vpop.f32.mrb[64].mxu1 }
 0x2c4   : > { %v2158_v35 = vpop.f32.mrb[65].mxu1  ;;  %v2157_v45 = vadd.f32 %v4575_v26, %v2156_v28 }
 0x2c7   : > { %v2161_v32 = vpop.f32.mrb[66].mxu1 }
 0x2c8   : > { %v2162_v3 = vadd.f32 %v4575_v26, %v2161_v32  ;;  %v2163_v21 = vpop.f32.mrb[67].mxu1 }
 0x2ca   : > { %v2746_v47 = vpack.c.bf16 %v2162_v3, %v2157_v45 }
 0x2cb   : > { %v2166_v0 = vpop.f32.mrb[68].mxu1 }
 0x2cc   : > { %2747 = vst [vmem:[%s4581_s23] sm:$0xff] %v2746_v47   ;;  %v2168_v13 = vpop.f32.mrb[69].mxu1  ;;  %v2167_v43 = vadd.f32 %v4575_v26, %v2166_v0 }
 0x2cf   : > { %v2171_v9 = vpop.f32.mrb[70].mxu1 }
 0x2d0   : > { %v2172_v24 = vadd.f32 %v4575_v26, %v2171_v9  ;;  %v2173_v53 = vpop.f32.mrb[71].mxu1 }
 0x2d2   : > { %v2751_v6 = vpack.c.bf16 %v2172_v24, %v2167_v43 }
 0x2d3   : > { %v2176_v19 = vpop.f32.mrb[72].mxu1 }
 0x2d4   : > { %2823 = vst [vmem:[%s4581_s23 + $0x8] sm:$0xff] %v2751_v6   ;;  %v2178_v4 = vpop.f32.mrb[73].mxu1  ;;  %v2177_v36 = vadd.f32 %v4575_v26, %v2176_v19 }
 0x2d7   : > { %v2181_v55 = vpop.f32.mrb[74].mxu1 }
 0x2d8   : > { %v2182_v12 = vadd.f32 %v4575_v26, %v2181_v55  ;;  %v2183_v37 = vpop.f32.mrb[75].mxu1 }
 0x2da   : > { %v2756_v56 = vpack.c.bf16 %v2182_v12, %v2177_v36 }
 0x2db   : > { %v2186_v31 = vpop.f32.mrb[76].mxu1 }
 0x2dc   : > { %2824 = vst [vmem:[%s4581_s23 + $0x10] sm:$0xff] %v2756_v56   ;;  %v2188_v27 = vpop.f32.mrb[77].mxu1  ;;  %v2187_v29 = vadd.f32 %v4575_v26, %v2186_v31 }
 0x2df   : > { %v2191_v48 = vpop.f32.mrb[78].mxu1 }
 0x2e0   : > { %v2192_v16 = vadd.f32 %v4575_v26, %v2191_v48  ;;  %v2193_v11 = vpop.f32.mrb[79].mxu1 }
 0x2e2   : > { %v2761_v8 = vpack.c.bf16 %v2192_v16, %v2187_v29 }
 0x2e3   : > { %v2196_v51 = vpop.f32.mrb[80].mxu1 }
 0x2e4   : > { %2825 = vst [vmem:[%s4581_s23 + $0x18] sm:$0xff] %v2761_v8   ;;  %v2198_v63 = vpop.f32.mrb[81].mxu1  ;;  %v2197_v20 = vadd.f32 %v4575_v26, %v2196_v51 }
 0x2e7   : > { %v2201_v58 = vpop.f32.mrb[82].mxu1 }
 0x2e8   : > { %v2202_v46 = vadd.f32 %v4575_v26, %v2201_v58  ;;  %v2203_v22 = vpop.f32.mrb[83].mxu1 }
 0x2ea   : > { %v2766_v34 = vpack.c.bf16 %v2202_v46, %v2197_v20 }
 0x2eb   : > { %v2206_v5 = vpop.f32.mrb[84].mxu1 }
 0x2ec   : > { %2826 = vst [vmem:[%s4581_s23 + $0x20] sm:$0xff] %v2766_v34   ;;  %v2208_v41 = vpop.f32.mrb[85].mxu1  ;;  %v2207_v44 = vadd.f32 %v4575_v26, %v2206_v5 }
 0x2ef   : > { %v2211_v57 = vpop.f32.mrb[86].mxu1 }
 0x2f0   : > { %v2212_v2 = vadd.f32 %v4575_v26, %v2211_v57  ;;  %v2213_v52 = vpop.f32.mrb[87].mxu1 }
 0x2f2   : > { %v2771_v59 = vpack.c.bf16 %v2212_v2, %v2207_v44 }
 0x2f3   : > { %v2216_v60 = vpop.f32.mrb[88].mxu1 }
 0x2f4   : > { %2827 = vst [vmem:[%s4581_s23 + $0x28] sm:$0xff] %v2771_v59   ;;  %v2218_v49 = vpop.f32.mrb[89].mxu1  ;;  %v2217_v61 = vadd.f32 %v4575_v26, %v2216_v60 }
 0x2f7   : > { %v2221_v1 = vpop.f32.mrb[90].mxu1 }
 0x2f8   : > { %v2222_v18 = vadd.f32 %v4575_v26, %v2221_v1  ;;  %v2223_v33 = vpop.f32.mrb[91].mxu1 }
 0x2fa   : > { %v2776_v14 = vpack.c.bf16 %v2222_v18, %v2217_v61 }
 0x2fb   : > { %v2226_v38 = vpop.f32.mrb[92].mxu1 }
 0x2fc   : > { %2828 = vst [vmem:[%s4581_s23 + $0x30] sm:$0xff] %v2776_v14   ;;  %v2228_v54 = vpop.f32.mrb[93].mxu1  ;;  %v2227_v42 = vadd.f32 %v4575_v26, %v2226_v38 }
 0x2ff   : > { %v2231_v50 = vpop.f32.mrb[94].mxu1 }
 0x300   : > { %v2232_v62 = vadd.f32 %v4575_v26, %v2231_v50  ;;  %v2233_v39 = vpop.f32.mrb[95].mxu1 }
 0x302   : > { %v2781_v15 = vpack.c.bf16 %v2232_v62, %v2227_v42 }
 0x303   : > { %v2236_v10 = vpop.f32.mrb[96].mxu1 }
 0x304   : > { %2829 = vst [vmem:[%s4581_s23 + $0x38] sm:$0xff] %v2781_v15   ;;  %v2238_v25 = vpop.f32.mrb[97].mxu1  ;;  %v2237_v7 = vadd.f32 %v4575_v26, %v2236_v10 }
 0x307   : > { %v2241_v40 = vpop.f32.mrb[98].mxu1 }
 0x308   : > { %v2242_v17 = vadd.f32 %v4575_v26, %v2241_v40  ;;  %v2243_v30 = vpop.f32.mrb[99].mxu1 }
 0x30a   : > { %v2786_v23 = vpack.c.bf16 %v2242_v17, %v2237_v7 }
 0x30b   : > { %v2246_v28 = vpop.f32.mrb[100].mxu1 }
 0x30c   : > { %2830 = vst [vmem:[%s4581_s23 + $0x40] sm:$0xff] %v2786_v23   ;;  %v2248_v35 = vpop.f32.mrb[101].mxu1  ;;  %v2247_v45 = vadd.f32 %v4575_v26, %v2246_v28 }
 0x30f   : > { %v2251_v32 = vpop.f32.mrb[102].mxu1 }
 0x310   : > { %v2252_v3 = vadd.f32 %v4575_v26, %v2251_v32  ;;  %v2253_v21 = vpop.f32.mrb[103].mxu1 }
 0x312   : > { %v2791_v47 = vpack.c.bf16 %v2252_v3, %v2247_v45 }
 0x313   : > { %v2256_v0 = vpop.f32.mrb[104].mxu1 }
 0x314   : > { %2831 = vst [vmem:[%s4581_s23 + $0x48] sm:$0xff] %v2791_v47   ;;  %v2258_v13 = vpop.f32.mrb[105].mxu1  ;;  %v2257_v43 = vadd.f32 %v4575_v26, %v2256_v0 }
 0x317   : > { %v2261_v9 = vpop.f32.mrb[106].mxu1 }
 0x318   : > { %v2262_v24 = vadd.f32 %v4575_v26, %v2261_v9  ;;  %v2263_v53 = vpop.f32.mrb[107].mxu1 }
 0x31a   : > { %v2796_v6 = vpack.c.bf16 %v2262_v24, %v2257_v43 }
 0x31b   : > { %v2266_v19 = vpop.f32.mrb[108].mxu1 }
 0x31c   : > { %2832 = vst [vmem:[%s4581_s23 + $0x50] sm:$0xff] %v2796_v6   ;;  %v2268_v4 = vpop.f32.mrb[109].mxu1  ;;  %v2267_v36 = vadd.f32 %v4575_v26, %v2266_v19 }
 0x31f   : > { %v2271_v55 = vpop.f32.mrb[110].mxu1 }
 0x320   : > { %v2272_v12 = vadd.f32 %v4575_v26, %v2271_v55  ;;  %v2273_v37 = vpop.f32.mrb[111].mxu1 }
 0x322   : > { %v2801_v56 = vpack.c.bf16 %v2272_v12, %v2267_v36 }
 0x323   : > { %v2276_v31 = vpop.f32.mrb[112].mxu1 }
 0x324   : > { %2833 = vst [vmem:[%s4581_s23 + $0x58] sm:$0xff] %v2801_v56   ;;  %v2278_v27 = vpop.f32.mrb[113].mxu1  ;;  %v2277_v29 = vadd.f32 %v4575_v26, %v2276_v31 }
 0x327   : > { %v2281_v48 = vpop.f32.mrb[114].mxu1 }
 0x328   : > { %v2282_v16 = vadd.f32 %v4575_v26, %v2281_v48  ;;  %v2283_v11 = vpop.f32.mrb[115].mxu1 }
 0x32a   : > { %v2806_v8 = vpack.c.bf16 %v2282_v16, %v2277_v29 }
 0x32b   : > { %v2286_v51 = vpop.f32.mrb[116].mxu1 }
 0x32c   : > { %2834 = vst [vmem:[%s4581_s23 + $0x60] sm:$0xff] %v2806_v8   ;;  %v2288_v63 = vpop.f32.mrb[117].mxu1  ;;  %v2287_v20 = vadd.f32 %v4575_v26, %v2286_v51 }
 0x32f   : > { %v2291_v58 = vpop.f32.mrb[118].mxu1 }
 0x330   : > { %v2292_v46 = vadd.f32 %v4575_v26, %v2291_v58  ;;  %v2293_v22 = vpop.f32.mrb[119].mxu1 }
 0x332   : > { %v2811_v34 = vpack.c.bf16 %v2292_v46, %v2287_v20 }
 0x333   : > { %v2296_v5 = vpop.f32.mrb[120].mxu1 }
 0x334   : > { %2835 = vst [vmem:[%s4581_s23 + $0x68] sm:$0xff] %v2811_v34   ;;  %v2298_v41 = vpop.f32.mrb[121].mxu1  ;;  %v2297_v44 = vadd.f32 %v4575_v26, %v2296_v5 }
 0x337   : > { %v2301_v57 = vpop.f32.mrb[122].mxu1 }
 0x338   : > { %v2302_v2 = vadd.f32 %v4575_v26, %v2301_v57  ;;  %v2303_v52 = vpop.f32.mrb[123].mxu1 }
 0x33a   : > { %v2816_v59 = vpack.c.bf16 %v2302_v2, %v2297_v44 }
 0x33b   : > { %v2306_v60 = vpop.f32.mrb[124].mxu1 }
 0x33c   : > { %2836 = vst [vmem:[%s4581_s23 + $0x70] sm:$0xff] %v2816_v59   ;;  %v2308_v49 = vpop.f32.mrb[125].mxu1  ;;  %v2307_v61 = vadd.f32 %v4575_v26, %v2306_v60 }
 0x33f   : > { %v2311_v1 = vpop.f32.mrb[126].mxu1 }
 0x340   : > { %v2312_v18 = vadd.f32 %v4575_v26, %v2311_v1  ;;  %v2313_v33 = vpop.f32.mrb[127].mxu1 }
 0x342   : > { %v2821_v14 = vpack.c.bf16 %v2312_v18, %v2307_v61 }
 0x344   : > { %2837 = vst [vmem:[%s4581_s23 + $0x78] sm:$0xff] %v2821_v14  }
 0x345   : > { %3378 = shalt.err (!%p3375_p3)
}
 0x346   : > { %s3379_s25 = scalar_lea.hbm %s4633_s8, 2048  ;;  %s3383_s16 = scalar_lea.hbm %s4686_s5, 8192 }
 0x347   : > { %p3380_p4 = scmp.ne.s32.totalorder %s4633_s8, %s3379_s25  ;;  %p3384_p9 = scmp.lt.u32.totalorder %s4633_s8, %s4686_s5 }
 0x348   : > { %p3385_p10 = scmp.lt.u32.totalorder %s3383_s16, %s3379_s25  ;;  %p3387_p12 = scmp.lt.u32.totalorder %s3379_s25, %s4633_s8 }
 0x349   : > { %p3381_p7 = pnand %p3380_p4, %p3502_p5 }
 0x34a   : > { %p3386_p11 = por %p3385_p10, %p3384_p9 }
 0x34b   : > { %p3382_p8 = pneg %p3381_p7 }
 0x34c   : > { %p3388_p13 = por %p3387_p12, %p3386_p11 }
 0x34e   : > { %p3389_p0 = pnand %p3388_p13, %p3382_p8 }
 0x350   : > { %3392 = shalt.err (!%p3389_p0)
}
 0x351   : > { %s3432_s23 = smov 64   ;;  %s3433_s26 = smov 4  }
 0x352   : > { %3175 = dma.vmem_to_hbm [thread:$0]  (%p3502_p5), %s4635_s30, 2048, %s4633_s8, %s4640_s22, %s3432_s23, %s3432_s23, %s3433_s26  }
 0x353 PF: > { %p3181_p1 = scmp.ge.s32.totalorder %s3427_s21, 2  ;;  %s2504_s6 = sand.u32 1, %s3415_s18  }
 0x354   : > { %s2505_s7 = scalar_lea.sflag [#allocation3], %s2504_s6 }
 0x355   : > { %p3178_p2 = pnand %p3181_p1, %p3506_p6 }
 0x357   : > { %3410 = dma.done.wait (!%p3178_p2), %s2505_s7, 2048  }
 0x358   : > { %3412 = vsyncadd (!%p3178_p2), %s2505_s7, 4294965248  ;;  %p15_p3 = scmp.ge.s32.totalorder %s3489_s24, 6   ;;  %s4711_s18 = smov %s3419_s19 }
 0x359   : > { %s4712_s19 = smov %s3423_s20  ;;  %s4713_s20 = smov %s3500_s27 }
 0x35a   : > { %s4714_s21 = smov %s3489_s24  ;;  %17 = sbr.rel (!%p15_p3) target bundleno = 3 (0x3), region = 75 }
 0x361   :  { %2510 = vsyncpa [#allocation3], 1 }
 0x362   :  { %2512 = vsyncpa [#allocation3 + $0x1], 1 }

</bundles_post_ra>
